<compile_context>
chip_gen: v7x
topology: tpu7x:2x2x1
jax: 0.10.0
libtpu: 0.0.40
codegen_flags: <defaults>
</compile_context>

<pallas_src>
import functools

import jax
import jax.numpy as jnp
from jax.experimental import pallas as pl
from jax.experimental.pallas import tpu as pltpu


# -----------------------------------------------------------------------------
# Feature probe: single-buffered (grid-invariant) weight blocks
# -----------------------------------------------------------------------------
_SINGLE_BUFFER_OK = None


def _single_buffer_supported():
    """Feature-detect pl.BlockSpec(..., pipeline_mode=pl.Buffered(1)) ONCE with a tiny
    standalone probe kernel so the real kernels never need a broad try/except that
    could mask genuine lowering bugs (perf-review correctness item).  Failure of the
    probe only disables an optional optimization."""
    global _SINGLE_BUFFER_OK
    if _SINGLE_BUFFER_OK is not None:
        return _SINGLE_BUFFER_OK
    try:
        wspec = pl.BlockSpec((8, 128), lambda i: (0, 0), pipeline_mode=pl.Buffered(1))
    except (AttributeError, TypeError):
        _SINGLE_BUFFER_OK = False
        return False

    def _probe(x_ref, w_ref, o_ref):
        o_ref[...] = x_ref[...] + w_ref[...]

    try:
        out = pl.pallas_call(
            _probe,
            out_shape=jax.ShapeDtypeStruct((16, 128), jnp.float32),
            grid=(2,),
            in_specs=[pl.BlockSpec((8, 128), lambda i: (i, 0)), wspec],
            out_specs=pl.BlockSpec((8, 128), lambda i: (i, 0)),
        )(jnp.zeros((16, 128), jnp.float32), jnp.ones((8, 128), jnp.float32))
        jax.block_until_ready(out)
        _SINGLE_BUFFER_OK = True
    except Exception:  # probe only: fall back to default double-buffered weights
        _SINGLE_BUFFER_OK = False
    return _SINGLE_BUFFER_OK


# -----------------------------------------------------------------------------
# Fused multi-layer LSTM (+ optional fc_out) kernel
# -----------------------------------------------------------------------------
def _fused_lstm_stack_kernel(*refs, n_layers, hid_dim, batch_p, time_block, fuse_fc):
    """One time tile of the whole L-layer LSTM stack (optionally + fc_out).

    Ref order (inputs, outputs, scratch):
      x (Tt*Bp, E), h0 (L,Bp,H), c0 (L,Bp,H),
      layer0: Wih^T (E,4H), Whh^T (H,4H), bias (1,4H),
      layers 1..L-1: Wih^T (H,4H), Whh^T (H,4H), bias (1,4H),
      [fc_w^T (H,Op), fc_b (1,Op)],
      [out (Tt*Bp, Op)], h_n (L,Bp,H), c_n (L,Bp,H),
      gates0 (Tt*Bp,4H) f32, [ytop (Tt*Bp,H) f32], h (L,Bp,H) f32, c (L,Bp,H) f32
    Gate order i, f, g, o (PyTorch convention).
    """
    L, H, Bp, Tt = n_layers, hid_dim, batch_p, time_block
    it = iter(refs)
    x_ref, h0_ref, c0_ref = next(it), next(it), next(it)
    wih0_ref, whh0_ref, b0_ref = next(it), next(it), next(it)
    wih_refs, whh_refs, b_refs = [], [], []
    for _ in range(L - 1):
        wih_refs.append(next(it))
        whh_refs.append(next(it))
        b_refs.append(next(it))
    if fuse_fc:
        fcw_ref, fcb_ref = next(it), next(it)
        out_ref = next(it)
    h_out_ref, c_out_ref = next(it), next(it)
    gates0_sc = next(it)
    ytop_sc = next(it) if fuse_fc else None
    h_sc, c_sc = next(it), next(it)

    t_idx = pl.program_id(0)

    @pl.when(t_idx == 0)
    def _():
        h_sc[...] = h0_ref[...]
        c_sc[...] = c0_ref[...]

    # Phase 1: layer-0 input projection + bias for the whole time tile as ONE
    # MXU-friendly matmul (hoisted off the serial recurrence critical path).
    gates0_sc[...] = (
        jnp.dot(x_ref[...], wih0_ref[...], preferred_element_type=jnp.float32)
        + b0_ref[...])

    whh0 = whh0_ref[...]
    wihs = [r[...] for r in wih_refs]
    whhs = [r[...] for r in whh_refs]
    biases = [r[...] for r in b_refs]

    h = [h_sc[l] for l in range(L)]
    c = [c_sc[l] for l in range(L)]
    feed = [None] * L   # most recent per-step output of layer l (input of layer l+1)

    def lstm_cell(g, c_prev):
        # NOTE: at production H (H % 128 == 0) every gate slice is a whole lane tile.
        i_g = jax.nn.sigmoid(g[:, 0 * H:1 * H])
        f_g = jax.nn.sigmoid(g[:, 1 * H:2 * H])
        g_g = jnp.tanh(g[:, 2 * H:3 * H])
        o_g = jax.nn.sigmoid(g[:, 3 * H:4 * H])
        c_new = f_g * c_prev + i_g * g_g
        h_new = o_g * jnp.tanh(c_new)
        return h_new, c_new

    # Phase 2: statically unrolled wavefront across (layer, time).  Layer l step t is
    # traced in the same wavefront as layer l-1 step t+1, so two independent
    # (Bp,H)@(H,4H) matmuls are in flight per window (hides MXU push->pop latency).
    # Layers are processed in DESCENDING order inside a wavefront so feed[l-1] still
    # holds step t when layer l consumes it.
    for s in range(Tt + L - 1):
        for l in range(min(L - 1, s), -1, -1):
            t = s - l
            if t >= Tt:
                continue
            if l == 0:
                g = (gates0_sc[t * Bp:(t + 1) * Bp, :]
                     + jnp.dot(h[0].astype(whh0.dtype), whh0,
                               preferred_element_type=jnp.float32))
            else:
                g = (jnp.dot(feed[l - 1].astype(wihs[l - 1].dtype), wihs[l - 1],
                             preferred_element_type=jnp.float32)
                     + jnp.dot(h[l].astype(whhs[l - 1].dtype), whhs[l - 1],
                               preferred_element_type=jnp.float32)
                     + biases[l - 1])
            h_new, c_new = lstm_cell(g, c[l])
            h[l], c[l], feed[l] = h_new, c_new, h_new
            if fuse_fc and l == L - 1:
                ytop_sc[t * Bp:(t + 1) * Bp, :] = h_new   # Bp-aligned (8 sublanes)

    for l in range(L):
        h_sc[l] = h[l]
        c_sc[l] = c[l]

    if fuse_fc:
        # Fused fc_out over the whole tile: one (Tt*Bp, H) @ (H, Op) matmul written
        # straight to the lane-dense (128-padded) output block; y_top never hits HBM.
        out_ref[...] = (
            jnp.dot(ytop_sc[...].astype(fcw_ref.dtype), fcw_ref[...],
                    preferred_element_type=jnp.float32)
            + fcb_ref[...]).astype(out_ref.dtype)

    # Final h/c writeback: single constant-index output block, written once on the
    # last time tile (correct for this 1-D sequential grid).
    @pl.when(t_idx == pl.num_programs(0) - 1)
    def _():
        for l in range(L):
            h_out_ref[l] = h[l].astype(h_out_ref.dtype)
            c_out_ref[l] = c[l].astype(c_out_ref.dtype)


def _round_up(x, m):
    return ((x + m - 1) // m) * m


def _pick_time_block(seq_len, target):
    """Largest Tt <= target with Tt | seq_len (batch is always padded to 8 sublanes,
    so any Tt keeps the (Tt*Bp, D) x/y blocks sublane-tiled)."""
    for tt in range(min(target, seq_len), 0, -1):
        if seq_len % tt == 0:
            return tt
    return seq_len


def lstm_stack(x, layers, h0, c0, *, time_block=32, matmul_dtype=jnp.float32,
               fc_w=None, fc_b=None):
    """Fused multi-layer LSTM over a full sequence: ONE pallas_call for the whole
    stack, optionally with fc_out fused onto the top layer.

    x: (S, B, E) f32; h0/c0: (L, B, H) f32.
    layers[l] = {"w_ih": (4H, D_in), "w_hh": (4H, H), "b_ih": (4H,), "b_hh": (4H,)}
    fc_w: (O, H) or None; fc_b: (O,) or None.
    Returns (out (S,B,O) f32 or None, h_n (L,B,H) f32, c_n (L,B,H) f32).
    Inter-layer dropout is training-only in PyTorch; eval mode == identity.
    """
    S, B, E = x.shape
    L = len(layers)
    H = layers[0]["w_hh"].shape[1]
    fuse_fc = fc_w is not None
    f32 = jnp.float32

    # Sublane-align the batch so every per-step (Bp, *) slice of gates / y scratch
    # starts on an 8-row boundary -> unmasked vld/vst (perf-review item).
    Bp = max(8, _round_up(B, 8))
    Tt = _pick_time_block(S, time_block)
    n_t = S // Tt

    xp = jnp.pad(jnp.asarray(x, f32), ((0, 0), (0, Bp - B), (0, 0)))
    x2 = xp.reshape(S * Bp, E).astype(matmul_dtype)        # lane-dense 2-D slab
    h0p = jnp.pad(jnp.asarray(h0, f32), ((0, 0), (0, Bp - B), (0, 0)))
    c0p = jnp.pad(jnp.asarray(c0, f32), ((0, 0), (0, Bp - B), (0, 0)))

    wih_t = [jnp.asarray(p["w_ih"].T, matmul_dtype) for p in layers]
    whh_t = [jnp.asarray(p["w_hh"].T, matmul_dtype) for p in layers]
    bias = [jnp.asarray((p["b_ih"] + p["b_hh"]).reshape(1, 4 * H), f32)
            for p in layers]

    single_buffer = _single_buffer_supported()

    def wspec(shape):
        # Grid-invariant weights / bias / initial state: single VMEM buffer.
        if single_buffer:
            return pl.BlockSpec(shape, lambda t: (0,) * len(shape),
                                pipeline_mode=pl.Buffered(1))
        return pl.BlockSpec(shape, lambda t: (0,) * len(shape))

    args = [x2, h0p, c0p, wih_t[0], whh_t[0], bias[0]]
    in_specs = [pl.BlockSpec((Tt * Bp, E), lambda t: (t, 0)),
                wspec((L, Bp, H)), wspec((L, Bp, H)),
                wspec((E, 4 * H)), wspec((H, 4 * H)), wspec((1, 4 * H))]
    for l in range(1, L):
        args += [wih_t[l], whh_t[l], bias[l]]
        in_specs += [wspec((H, 4 * H)), wspec((H, 4 * H)), wspec((1, 4 * H))]

    out_shapes, out_specs = [], []
    O = Op = 0
    if fuse_fc:
        O = fc_w.shape[0]
        Op = max(128, _round_up(O, 128))     # lane-dense output (perf-review item)
        fcw_p = jnp.zeros((H, Op), matmul_dtype).at[:, :O].set(
            jnp.asarray(fc_w.T, matmul_dtype))
        fcb_p = jnp.zeros((1, Op), f32).at[:, :O].set(
            jnp.asarray(fc_b, f32).reshape(1, O))
        args += [fcw_p, fcb_p]
        in_specs += [wspec((H, Op)), wspec((1, Op))]
        out_shapes.append(jax.ShapeDtypeStruct((S * Bp, Op), f32))
        out_specs.append(pl.BlockSpec((Tt * Bp, Op), lambda t: (t, 0)))
    out_shapes += [jax.ShapeDtypeStruct((L, Bp, H), f32)] * 2
    out_specs += [pl.BlockSpec((L, Bp, H), lambda t: (0, 0, 0))] * 2

    scratch = [pltpu.VMEM((Tt * Bp, 4 * H), f32)]            # layer-0 gates tile
    if fuse_fc:
        scratch.append(pltpu.VMEM((Tt * Bp, H), f32))         # top-layer y tile
    scratch += [pltpu.VMEM((L, Bp, H), f32),                  # h state
                pltpu.VMEM((L, Bp, H), f32)]                  # c state

    kernel = functools.partial(_fused_lstm_stack_kernel, n_layers=L, hid_dim=H,
                               batch_p=Bp, time_block=Tt, fuse_fc=fuse_fc)

    outs = pl.pallas_call(
        kernel,
        out_shape=tuple(out_shapes),
        grid_spec=pltpu.PrefetchScalarGridSpec(
            num_scalar_prefetch=0,
            grid=(n_t,),
            in_specs=in_specs,
            out_specs=tuple(out_specs),
            scratch_shapes=scratch,
        ),
        # Time tiles are inherently sequential.
        compiler_params=pltpu.CompilerParams(dimension_semantics=("arbitrary",)),
    )(*args)

    if fuse_fc:
        out2, h_n, c_n = outs
        out = out2.reshape(S, Bp, Op)[:, :B, :O]
    else:
        h_n, c_n = outs
        out = None
    return out, h_n[:, :B], c_n[:, :B]


# -----------------------------------------------------------------------------
# CdBk2CdBk forward
# -----------------------------------------------------------------------------
def cdbk2cdbk_forward(src, trg, params, *, matmul_dtype=jnp.float32, time_block=32):
    """CdBk2CdBk.forward (eval mode). src: (S_src, B) int32, trg: (T, B) int32.
    Returns outputs of shape (T, B, 64)."""
    emb_enc, emb_dec = params["emb_enc"], params["emb_dec"]
    enc_layers, dec_layers = params["encoder"], params["decoder"]
    s_src, batch = src.shape
    t_len = trg.shape[0]
    L = len(enc_layers)
    H = enc_layers[0]["w_hh"].shape[1]

    # ---- encoder: embed(src) -> L-layer LSTM, zero init state (top y never used) --
    enc_in = jnp.take(emb_enc, src, axis=0)                         # (S_src, B, E)
    zeros = jnp.zeros((L, batch, H), jnp.float32)
    _, hidden, cell = lstm_stack(enc_in, enc_layers, zeros, zeros,
                                 time_block=time_block, matmul_dtype=matmul_dtype)

    # ---- decoder input schedule: pure teacher forcing (the torch loop never feeds
    #      decoder outputs back in), built as ONE vectorized gather + select --------
    t_arr = jnp.arange(t_len)
    prev = t_arr - 1
    use_enc = (t_arr > 0) & (prev % 2 == 0) & (prev < 2 * s_src)
    tok_dec = trg[jnp.maximum(prev, 0)]                             # t=0 -> trg[0]
    tok_enc = trg[jnp.where(use_enc, prev // 2, 0)]
    dec_in = jnp.where(use_enc[:, None, None],
                       jnp.take(emb_enc, tok_enc, axis=0),
                       jnp.take(emb_dec, tok_dec, axis=0))          # (T, B, E)

    # ---- decoder: L-layer LSTM seeded by encoder state, fc_out fused in-kernel ----
    out, _, _ = lstm_stack(dec_in, dec_layers, hidden, cell,
                           time_block=time_block, matmul_dtype=matmul_dtype,
                           fc_w=params["fc_w"], fc_b=params["fc_b"])
    return out


# -----------------------------------------------------------------------------
# Parameters (PyTorch-style init) and pure-JAX reference
# -----------------------------------------------------------------------------
def _lstm_params(key, in_dim, hid_dim, n_layers):
    params = []
    bound = 1.0 / (hid_dim ** 0.5)
    for layer in range(n_layers):
        d_in = in_dim if layer == 0 else hid_dim
        key, k1, k2, k3, k4 = jax.random.split(key, 5)
        params.append({
            "w_ih": jax.random.uniform(k1, (4 * hid_dim, d_in), jnp.float32, -bound, bound),
            "w_hh": jax.random.uniform(k2, (4 * hid_dim, hid_dim), jnp.float32, -bound, bound),
            "b_ih": jax.random.uniform(k3, (4 * hid_dim,), jnp.float32, -bound, bound),
            "b_hh": jax.random.uniform(k4, (4 * hid_dim,), jnp.float32, -bound, bound),
        })
    return params


def make_params(key, *, vocab_enc, vocab_dec, emb_dim, hid_dim, n_layers, out_dim):
    k_ee, k_ed, k_enc, k_dec, k_fw, k_fb = jax.random.split(key, 6)
    fb = 1.0 / (hid_dim ** 0.5)
    return {
        "emb_enc": jax.random.normal(k_ee, (vocab_enc, emb_dim), jnp.float32),
        "emb_dec": jax.random.normal(k_ed, (vocab_dec, emb_dim), jnp.float32),
        "encoder": _lstm_params(k_enc, emb_dim, hid_dim, n_layers),
        "decoder": _lstm_params(k_dec, emb_dim, hid_dim, n_layers),
        "fc_w": jax.random.uniform(k_fw, (out_dim, hid_dim), jnp.float32, -fb, fb),
        "fc_b": jax.random.uniform(k_fb, (out_dim,), jnp.float32, -fb, fb),
    }


def _ref_lstm_stack(x, layers, h0, c0):
    hp = jax.lax.Precision.HIGHEST

    def layer(xs, p, h0l, c0l):
        H = p["w_hh"].shape[1]

        def step(carry, x_t):
            h, c = carry
            gates = (jnp.dot(x_t, p["w_ih"].T, precision=hp)
                     + jnp.dot(h, p["w_hh"].T, precision=hp)
                     + p["b_ih"] + p["b_hh"])
            i = jax.nn.sigmoid(gates[:, 0 * H:1 * H])
            f = jax.nn.sigmoid(gates[:, 1 * H:2 * H])
            g = jnp.tanh(gates[:, 2 * H:3 * H])
            o = jax.nn.sigmoid(gates[:, 3 * H:4 * H])
            c_new = f * c + i * g
            h_new = o * jnp.tanh(c_new)
            return (h_new, c_new), h_new

        (h_n, c_n), ys = jax.lax.scan(step, (h0l, c0l), xs)
        return ys, h_n, c_n

    ys = x
    hs, cs = [], []
    for li, p in enumerate(layers):
        ys, h_n, c_n = layer(ys, p, h0[li], c0[li])
        hs.append(h_n)
        cs.append(c_n)
    return ys, jnp.stack(hs, 0), jnp.stack(cs, 0)


def _reference_forward(src, trg, params):
    """Pure-JAX mirror of the PyTorch CdBk2CdBk.forward loop (step-by-step decoder)."""
    hp = jax.lax.Precision.HIGHEST
    emb_enc, emb_dec = params["emb_enc"], params["emb_dec"]
    enc_layers, dec_layers = params["encoder"], params["decoder"]
    n_layers = len(enc_layers)
    hid_dim = enc_layers[0]["w_hh"].shape[1]
    s_src, batch = src.shape
    t_len = trg.shape[0]

    zeros = jnp.zeros((n_layers, batch, hid_dim), jnp.float32)
    _, hidden, cell = _ref_lstm_stack(emb_enc[src], enc_layers, zeros, zeros)

    outputs = []
    inp = emb_dec[trg[0]][None]                                     # (1, B, E)
    for t in range(t_len):
        y, hidden, cell = _ref_lstm_stack(inp, dec_layers, hidden, cell)
        pred = jnp.dot(y[0], params["fc_w"].T, precision=hp) + params["fc_b"]
        outputs.append(pred)
        if (t % 2 == 0) and (t < s_src * 2):
            inp = emb_enc[trg[t // 2]][None]
        else:
            inp = emb_dec[trg[t]][None]
    return jnp.stack(outputs, 0)


if __name__ == "__main__":
    emb_dim, hid_dim, n_layers, out_dim = 16, 32, 2, 64
    src_len, trg_len, batch = 6, 8, 4
    vocab_enc, vocab_dec = 40, 40

    key = jax.random.PRNGKey(0)
    key, k_src, k_trg, k_par = jax.random.split(key, 4)
    src = jax.random.randint(k_src, (src_len, batch), 0, vocab_enc, dtype=jnp.int32)
    trg = jax.random.randint(k_trg, (trg_len, batch), 0, vocab_dec, dtype=jnp.int32)
    params = make_params(k_par, vocab_enc=vocab_enc, vocab_dec=vocab_dec,
                         emb_dim=emb_dim, hid_dim=hid_dim, n_layers=n_layers,
                         out_dim=out_dim)

    # f32 path (matches the PyTorch module numerically).
    out = jax.block_until_ready(cdbk2cdbk_forward(src, trg, params))
    assert out.shape == (trg_len, batch, out_dim)

    ref = jax.block_until_ready(_reference_forward(src, trg, params))
    assert jnp.allclose(out, ref, atol=1e-3, rtol=1e-3), "f32 kernel mismatch vs reference"

    # bf16 matmul-operand path (v6e/v7x MXU); h/c state, gates scratch and all gate
    # math stay f32 -> only matmul-operand rounding differs (outputs are O(1) scale).
    out_bf16 = jax.block_until_ready(
        cdbk2cdbk_forward(src, trg, params, matmul_dtype=jnp.bfloat16))
    assert out_bf16.shape == (trg_len, batch, out_dim)
    assert bool(jnp.all(jnp.isfinite(out_bf16)))
    assert float(jnp.max(jnp.abs(out_bf16 - ref))) < 0.1, "bf16 kernel diverged"

    print("KERNEL_OK")
</pallas_src>

<mosaic_0001>
module attributes {stable_mosaic.version = 11 : i64} {
  func.func @_probe(%arg0: i32, %arg1: memref<8x128xf32, #tpu.memory_space<vmem>>, %arg2: memref<8x128xf32, #tpu.memory_space<vmem>>, %arg3: memref<8x128xf32, #tpu.memory_space<vmem>>) attributes {dimension_semantics = [#tpu.dimension_semantics<arbitrary>], iteration_bounds = array<i64: 2>, scalar_prefetch = 0 : i64, scratch_operands = 0 : i64, tpu.core_type = #tpu.core_type<tc>, window_params = [{transform_indices = @transform_0, window_bounds = array<i64: 8, 128>}, {pipeline_mode = #tpu.pipeline_mode<synchronous>, transform_indices = @transform_1, window_bounds = array<i64: 8, 128>}, {transform_indices = @transform_2, window_bounds = array<i64: 8, 128>}]} {
    %c0 = arith.constant 0 : index
    %c0_0 = arith.constant 0 : index
    %0 = vector.load %arg1[%c0, %c0_0] : memref<8x128xf32, #tpu.memory_space<vmem>>, vector<8x128xf32>
    %c0_1 = arith.constant 0 : index
    %c0_2 = arith.constant 0 : index
    %1 = vector.load %arg2[%c0_1, %c0_2] : memref<8x128xf32, #tpu.memory_space<vmem>>, vector<8x128xf32>
    %2 = arith.addf %0, %1 : vector<8x128xf32>
    %c0_3 = arith.constant 0 : index
    %c0_4 = arith.constant 0 : index
    %3 = vector.load %arg3[%c0_3, %c0_4] : memref<8x128xf32, #tpu.memory_space<vmem>>, vector<8x128xf32>
    tpu.vector_store %arg3[%c0_3, %c0_4], %2 {strides = array<i32>} : memref<8x128xf32, #tpu.memory_space<vmem>>, vector<8x128xf32>,
    return
  }
  func.func @transform_0(%arg0: i32) -> (i32, i32) {
    %c0_i32 = arith.constant 0 : i32
    %c0_i32_0 = arith.constant 0 : i32
    return %arg0, %c0_i32 : i32, i32
  }
  func.func @transform_1(%arg0: i32) -> (i32, i32) {
    %c0_i32 = arith.constant 0 : i32
    %c0_i32_0 = arith.constant 0 : i32
    %c0_i32_1 = arith.constant 0 : i32
    return %c0_i32, %c0_i32_0 : i32, i32
  }
  func.func @transform_2(%arg0: i32) -> (i32, i32) {
    %c0_i32 = arith.constant 0 : i32
    %c0_i32_0 = arith.constant 0 : i32
    return %arg0, %c0_i32 : i32, i32
  }
}

module attributes {stable_mosaic.version = 11 : i64} {
  func.func @_fused_lstm_stack_kernel(%arg0: i32, %arg1: memref<48x16xf32, #tpu.memory_space<vmem>>, %arg2: memref<2x8x32xf32, #tpu.memory_space<vmem>>, %arg3: memref<2x8x32xf32, #tpu.memory_space<vmem>>, %arg4: memref<16x128xf32, #tpu.memory_space<vmem>>, %arg5: memref<32x128xf32, #tpu.memory_space<vmem>>, %arg6: memref<1x128xf32, #tpu.memory_space<vmem>>, %arg7: memref<32x128xf32, #tpu.memory_space<vmem>>, %arg8: memref<32x128xf32, #tpu.memory_space<vmem>>, %arg9: memref<1x128xf32, #tpu.memory_space<vmem>>, %arg10: memref<2x8x32xf32, #tpu.memory_space<vmem>>, %arg11: memref<2x8x32xf32, #tpu.memory_space<vmem>>, %arg12: memref<48x128xf32, #tpu.memory_space<vmem>>, %arg13: memref<2x8x32xf32, #tpu.memory_space<vmem>>, %arg14: memref<2x8x32xf32, #tpu.memory_space<vmem>>) attributes {dimension_semantics = [#tpu.dimension_semantics<arbitrary>], iteration_bounds = array<i64: 1>, scalar_prefetch = 0 : i64, scratch_operands = 3 : i64, tpu.core_type = #tpu.core_type<tc>, window_params = [{transform_indices = @transform_0, window_bounds = array<i64: 48, 16>}, {pipeline_mode = #tpu.pipeline_mode<synchronous>, transform_indices = @transform_1, window_bounds = array<i64: 2, 8, 32>}, {pipeline_mode = #tpu.pipeline_mode<synchronous>, transform_indices = @transform_2, window_bounds = array<i64: 2, 8, 32>}, {pipeline_mode = #tpu.pipeline_mode<synchronous>, transform_indices = @transform_3, window_bounds = array<i64: 16, 128>}, {pipeline_mode = #tpu.pipeline_mode<synchronous>, transform_indices = @transform_4, window_bounds = array<i64: 32, 128>}, {pipeline_mode = #tpu.pipeline_mode<synchronous>, transform_indices = @transform_5, window_bounds = array<i64: 1, 128>}, {pipeline_mode = #tpu.pipeline_mode<synchronous>, transform_indices = @transform_6, window_bounds = array<i64: 32, 128>}, {pipeline_mode = #tpu.pipeline_mode<synchronous>, transform_indices = @transform_7, window_bounds = array<i64: 32, 128>}, {pipeline_mode = #tpu.pipeline_mode<synchronous>, transform_indices = @transform_8, window_bounds = array<i64: 1, 128>}, {pipeline_mode = #tpu.pipeline_mode<synchronous>, transform_indices = @transform_9, window_bounds = array<i64: 2, 8, 32>}, {pipeline_mode = #tpu.pipeline_mode<synchronous>, transform_indices = @transform_10, window_bounds = array<i64: 2, 8, 32>}]} {
    %c0_i32 = arith.constant 0 : i32
    %0 = arith.cmpi eq, %arg0, %c0_i32 : i32
    %1 = arith.extui %0 : i1 to i32
    %c0_i32_0 = arith.constant 0 : i32
    %2 = arith.cmpi ne, %1, %c0_i32_0 : i32
    scf.if %2 {
      %c0_102 = arith.constant 0 : index
      %c0_103 = arith.constant 0 : index
      %c0_104 = arith.constant 0 : index
      %385 = vector.load %arg2[%c0_102, %c0_103, %c0_104] : memref<2x8x32xf32, #tpu.memory_space<vmem>>, vector<2x8x32xf32>
      %c0_105 = arith.constant 0 : index
      %c0_106 = arith.constant 0 : index
      %c0_107 = arith.constant 0 : index
      %386 = vector.load %arg13[%c0_105, %c0_106, %c0_107] : memref<2x8x32xf32, #tpu.memory_space<vmem>>, vector<2x8x32xf32>
      tpu.vector_store %arg13[%c0_105, %c0_106, %c0_107], %385 {strides = array<i32>} : memref<2x8x32xf32, #tpu.memory_space<vmem>>, vector<2x8x32xf32>,
      %c0_108 = arith.constant 0 : index
      %c0_109 = arith.constant 0 : index
      %c0_110 = arith.constant 0 : index
      %387 = vector.load %arg3[%c0_108, %c0_109, %c0_110] : memref<2x8x32xf32, #tpu.memory_space<vmem>>, vector<2x8x32xf32>
      %c0_111 = arith.constant 0 : index
      %c0_112 = arith.constant 0 : index
      %c0_113 = arith.constant 0 : index
      %388 = vector.load %arg14[%c0_111, %c0_112, %c0_113] : memref<2x8x32xf32, #tpu.memory_space<vmem>>, vector<2x8x32xf32>
      tpu.vector_store %arg14[%c0_111, %c0_112, %c0_113], %387 {strides = array<i32>} : memref<2x8x32xf32, #tpu.memory_space<vmem>>, vector<2x8x32xf32>,
    } else {
    }
    %c0 = arith.constant 0 : index
    %c0_1 = arith.constant 0 : index
    %3 = vector.load %arg1[%c0, %c0_1] : memref<48x16xf32, #tpu.memory_space<vmem>>, vector<48x16xf32>
    %c0_2 = arith.constant 0 : index
    %c0_3 = arith.constant 0 : index
    %4 = vector.load %arg4[%c0_2, %c0_3] : memref<16x128xf32, #tpu.memory_space<vmem>>, vector<16x128xf32>
    %cst = arith.constant dense<0.000000e+00> : vector<48x128xf32>
    %5 = tpu.matmul %3, %4, %cst {dimension_numbers = #tpu.dot_dimension_numbers<[1], [0], [0], [1], [0, 0, 1, 1], [], []>} : vector<48x16xf32>, vector<16x128xf32>, vector<48x128xf32> -> vector<48x128xf32>
    %c0_4 = arith.constant 0 : index
    %c0_5 = arith.constant 0 : index
    %6 = vector.load %arg6[%c0_4, %c0_5] : memref<1x128xf32, #tpu.memory_space<vmem>>, vector<1x128xf32>
    %7 = vector.broadcast %6 : vector<1x128xf32> to vector<48x128xf32>
    %8 = arith.addf %5, %7 : vector<48x128xf32>
    %c0_6 = arith.constant 0 : index
    %c0_7 = arith.constant 0 : index
    %9 = vector.load %arg12[%c0_6, %c0_7] : memref<48x128xf32, #tpu.memory_space<vmem>>, vector<48x128xf32>
    tpu.vector_store %arg12[%c0_6, %c0_7], %8 {strides = array<i32>} : memref<48x128xf32, #tpu.memory_space<vmem>>, vector<48x128xf32>,
    %c0_8 = arith.constant 0 : index
    %c0_9 = arith.constant 0 : index
    %10 = vector.load %arg5[%c0_8, %c0_9] : memref<32x128xf32, #tpu.memory_space<vmem>>, vector<32x128xf32>
    %c0_10 = arith.constant 0 : index
    %c0_11 = arith.constant 0 : index
    %11 = vector.load %arg7[%c0_10, %c0_11] : memref<32x128xf32, #tpu.memory_space<vmem>>, vector<32x128xf32>
    %c0_12 = arith.constant 0 : index
    %c0_13 = arith.constant 0 : index
    %12 = vector.load %arg8[%c0_12, %c0_13] : memref<32x128xf32, #tpu.memory_space<vmem>>, vector<32x128xf32>
    %c0_14 = arith.constant 0 : index
    %c0_15 = arith.constant 0 : index
    %13 = vector.load %arg9[%c0_14, %c0_15] : memref<1x128xf32, #tpu.memory_space<vmem>>, vector<1x128xf32>
    %c0_16 = arith.constant 0 : index
    %c0_17 = arith.constant 0 : index
    %c0_18 = arith.constant 0 : index
    %14 = vector.load %arg13[%c0_16, %c0_17, %c0_18] : memref<2x8x32xf32, #tpu.memory_space<vmem>>, vector<1x8x32xf32>
    %15 = vector.shape_cast %14 : vector<1x8x32xf32> to vector<8x32xf32>
    %c1 = arith.constant 1 : index
    %c0_19 = arith.constant 0 : index
    %c0_20 = arith.constant 0 : index
    %16 = vector.load %arg13[%c1, %c0_19, %c0_20] : memref<2x8x32xf32, #tpu.memory_space<vmem>>, vector<1x8x32xf32>
    %17 = vector.shape_cast %16 : vector<1x8x32xf32> to vector<8x32xf32>
    %c0_21 = arith.constant 0 : index
    %c0_22 = arith.constant 0 : index
    %c0_23 = arith.constant 0 : index
    %18 = vector.load %arg14[%c0_21, %c0_22, %c0_23] : memref<2x8x32xf32, #tpu.memory_space<vmem>>, vector<1x8x32xf32>
    %19 = vector.shape_cast %18 : vector<1x8x32xf32> to vector<8x32xf32>
    %c1_24 = arith.constant 1 : index
    %c0_25 = arith.constant 0 : index
    %c0_26 = arith.constant 0 : index
    %20 = vector.load %arg14[%c1_24, %c0_25, %c0_26] : memref<2x8x32xf32, #tpu.memory_space<vmem>>, vector<1x8x32xf32>
    %21 = vector.shape_cast %20 : vector<1x8x32xf32> to vector<8x32xf32>
    %c0_27 = arith.constant 0 : index
    %c0_28 = arith.constant 0 : index
    %22 = vector.load %arg12[%c0_27, %c0_28] : memref<48x128xf32, #tpu.memory_space<vmem>>, vector<8x128xf32>
    %cst_29 = arith.constant dense<0.000000e+00> : vector<8x128xf32>
    %23 = tpu.matmul %15, %10, %cst_29 {dimension_numbers = #tpu.dot_dimension_numbers<[1], [0], [0], [1], [0, 0, 1, 1], [], []>} : vector<8x32xf32>, vector<32x128xf32>, vector<8x128xf32> -> vector<8x128xf32>
    %24 = arith.addf %22, %23 : vector<8x128xf32>
    %25 = vector.extract_strided_slice %24 {offsets = [0, 0], sizes = [8, 32], strides = [1, 1]} : vector<8x128xf32> to vector<8x32xf32>
    %26 = arith.negf %25 : vector<8x32xf32>
    %27 = math.exp %26 : vector<8x32xf32>
    %cst_30 = arith.constant 1.000000e+00 : f32
    %28 = vector.broadcast %cst_30 : f32 to vector<8x32xf32>
    %29 = arith.addf %28, %27 : vector<8x32xf32>
    %30 = arith.divf %28, %29 : vector<8x32xf32>
    %31 = vector.extract_strided_slice %24 {offsets = [0, 32], sizes = [8, 32], strides = [1, 1]} : vector<8x128xf32> to vector<8x32xf32>
    %32 = arith.negf %31 : vector<8x32xf32>
    %33 = math.exp %32 : vector<8x32xf32>
    %cst_31 = arith.constant 1.000000e+00 : f32
    %34 = vector.broadcast %cst_31 : f32 to vector<8x32xf32>
    %35 = arith.addf %34, %33 : vector<8x32xf32>
    %36 = arith.divf %34, %35 : vector<8x32xf32>
    %37 = vector.extract_strided_slice %24 {offsets = [0, 64], sizes = [8, 32], strides = [1, 1]} : vector<8x128xf32> to vector<8x32xf32>
    %38 = math.tanh %37 : vector<8x32xf32>
    %39 = vector.extract_strided_slice %24 {offsets = [0, 96], sizes = [8, 32], strides = [1, 1]} : vector<8x128xf32> to vector<8x32xf32>
    %40 = arith.negf %39 : vector<8x32xf32>
    %41 = math.exp %40 : vector<8x32xf32>
    %cst_32 = arith.constant 1.000000e+00 : f32
    %42 = vector.broadcast %cst_32 : f32 to vector<8x32xf32>
    %43 = arith.addf %42, %41 : vector<8x32xf32>
    %44 = arith.divf %42, %43 : vector<8x32xf32>
    %45 = arith.mulf %36, %19 : vector<8x32xf32>
    %46 = arith.mulf %30, %38 : vector<8x32xf32>
    %47 = arith.addf %45, %46 : vector<8x32xf32>
    %48 = math.tanh %47 : vector<8x32xf32>
    %49 = arith.mulf %44, %48 : vector<8x32xf32>
    %cst_33 = arith.constant dense<0.000000e+00> : vector<8x128xf32>
    %50 = tpu.matmul %49, %11, %cst_33 {dimension_numbers = #tpu.dot_dimension_numbers<[1], [0], [0], [1], [0, 0, 1, 1], [], []>} : vector<8x32xf32>, vector<32x128xf32>, vector<8x128xf32> -> vector<8x128xf32>
    %cst_34 = arith.constant dense<0.000000e+00> : vector<8x128xf32>
    %51 = tpu.matmul %17, %12, %cst_34 {dimension_numbers = #tpu.dot_dimension_numbers<[1], [0], [0], [1], [0, 0, 1, 1], [], []>} : vector<8x32xf32>, vector<32x128xf32>, vector<8x128xf32> -> vector<8x128xf32>
    %52 = arith.addf %50, %51 : vector<8x128xf32>
    %53 = vector.broadcast %13 : vector<1x128xf32> to vector<8x128xf32>
    %54 = arith.addf %52, %53 : vector<8x128xf32>
    %55 = vector.extract_strided_slice %54 {offsets = [0, 0], sizes = [8, 32], strides = [1, 1]} : vector<8x128xf32> to vector<8x32xf32>
    %56 = arith.negf %55 : vector<8x32xf32>
    %57 = math.exp %56 : vector<8x32xf32>
    %cst_35 = arith.constant 1.000000e+00 : f32
    %58 = vector.broadcast %cst_35 : f32 to vector<8x32xf32>
    %59 = arith.addf %58, %57 : vector<8x32xf32>
    %60 = arith.divf %58, %59 : vector<8x32xf32>
    %61 = vector.extract_strided_slice %54 {offsets = [0, 32], sizes = [8, 32], strides = [1, 1]} : vector<8x128xf32> to vector<8x32xf32>
    %62 = arith.negf %61 : vector<8x32xf32>
    %63 = math.exp %62 : vector<8x32xf32>
    %cst_36 = arith.constant 1.000000e+00 : f32
    %64 = vector.broadcast %cst_36 : f32 to vector<8x32xf32>
    %65 = arith.addf %64, %63 : vector<8x32xf32>
    %66 = arith.divf %64, %65 : vector<8x32xf32>
    %67 = vector.extract_strided_slice %54 {offsets = [0, 64], sizes = [8, 32], strides = [1, 1]} : vector<8x128xf32> to vector<8x32xf32>
    %68 = math.tanh %67 : vector<8x32xf32>
    %69 = vector.extract_strided_slice %54 {offsets = [0, 96], sizes = [8, 32], strides = [1, 1]} : vector<8x128xf32> to vector<8x32xf32>
    %70 = arith.negf %69 : vector<8x32xf32>
    %71 = math.exp %70 : vector<8x32xf32>
    %cst_37 = arith.constant 1.000000e+00 : f32
    %72 = vector.broadcast %cst_37 : f32 to vector<8x32xf32>
    %73 = arith.addf %72, %71 : vector<8x32xf32>
    %74 = arith.divf %72, %73 : vector<8x32xf32>
    %75 = arith.mulf %66, %21 : vector<8x32xf32>
    %76 = arith.mulf %60, %68 : vector<8x32xf32>
    %77 = arith.addf %75, %76 : vector<8x32xf32>
    %78 = math.tanh %77 : vector<8x32xf32>
    %79 = arith.mulf %74, %78 : vector<8x32xf32>
    %c8 = arith.constant 8 : index
    %c0_38 = arith.constant 0 : index
    %80 = vector.load %arg12[%c8, %c0_38] : memref<48x128xf32, #tpu.memory_space<vmem>>, vector<8x128xf32>
    %cst_39 = arith.constant dense<0.000000e+00> : vector<8x128xf32>
    %81 = tpu.matmul %49, %10, %cst_39 {dimension_numbers = #tpu.dot_dimension_numbers<[1], [0], [0], [1], [0, 0, 1, 1], [], []>} : vector<8x32xf32>, vector<32x128xf32>, vector<8x128xf32> -> vector<8x128xf32>
    %82 = arith.addf %80, %81 : vector<8x128xf32>
    %83 = vector.extract_strided_slice %82 {offsets = [0, 0], sizes = [8, 32], strides = [1, 1]} : vector<8x128xf32> to vector<8x32xf32>
    %84 = arith.negf %83 : vector<8x32xf32>
    %85 = math.exp %84 : vector<8x32xf32>
    %cst_40 = arith.constant 1.000000e+00 : f32
    %86 = vector.broadcast %cst_40 : f32 to vector<8x32xf32>
    %87 = arith.addf %86, %85 : vector<8x32xf32>
    %88 = arith.divf %86, %87 : vector<8x32xf32>
    %89 = vector.extract_strided_slice %82 {offsets = [0, 32], sizes = [8, 32], strides = [1, 1]} : vector<8x128xf32> to vector<8x32xf32>
    %90 = arith.negf %89 : vector<8x32xf32>
    %91 = math.exp %90 : vector<8x32xf32>
    %cst_41 = arith.constant 1.000000e+00 : f32
    %92 = vector.broadcast %cst_41 : f32 to vector<8x32xf32>
    %93 = arith.addf %92, %91 : vector<8x32xf32>
    %94 = arith.divf %92, %93 : vector<8x32xf32>
    %95 = vector.extract_strided_slice %82 {offsets = [0, 64], sizes = [8, 32], strides = [1, 1]} : vector<8x128xf32> to vector<8x32xf32>
    %96 = math.tanh %95 : vector<8x32xf32>
    %97 = vector.extract_strided_slice %82 {offsets = [0, 96], sizes = [8, 32], strides = [1, 1]} : vector<8x128xf32> to vector<8x32xf32>
    %98 = arith.negf %97 : vector<8x32xf32>
    %99 = math.exp %98 : vector<8x32xf32>
    %cst_42 = arith.constant 1.000000e+00 : f32
    %100 = vector.broadcast %cst_42 : f32 to vector<8x32xf32>
    %101 = arith.addf %100, %99 : vector<8x32xf32>
    %102 = arith.divf %100, %101 : vector<8x32xf32>
    %103 = arith.mulf %94, %47 : vector<8x32xf32>
    %104 = arith.mulf %88, %96 : vector<8x32xf32>
    %105 = arith.addf %103, %104 : vector<8x32xf32>
    %106 = math.tanh %105 : vector<8x32xf32>
    %107 = arith.mulf %102, %106 : vector<8x32xf32>
    %cst_43 = arith.constant dense<0.000000e+00> : vector<8x128xf32>
    %108 = tpu.matmul %107, %11, %cst_43 {dimension_numbers = #tpu.dot_dimension_numbers<[1], [0], [0], [1], [0, 0, 1, 1], [], []>} : vector<8x32xf32>, vector<32x128xf32>, vector<8x128xf32> -> vector<8x128xf32>
    %cst_44 = arith.constant dense<0.000000e+00> : vector<8x128xf32>
    %109 = tpu.matmul %79, %12, %cst_44 {dimension_numbers = #tpu.dot_dimension_numbers<[1], [0], [0], [1], [0, 0, 1, 1], [], []>} : vector<8x32xf32>, vector<32x128xf32>, vector<8x128xf32> -> vector<8x128xf32>
    %110 = arith.addf %108, %109 : vector<8x128xf32>
    %111 = vector.broadcast %13 : vector<1x128xf32> to vector<8x128xf32>
    %112 = arith.addf %110, %111 : vector<8x128xf32>
    %113 = vector.extract_strided_slice %112 {offsets = [0, 0], sizes = [8, 32], strides = [1, 1]} : vector<8x128xf32> to vector<8x32xf32>
    %114 = arith.negf %113 : vector<8x32xf32>
    %115 = math.exp %114 : vector<8x32xf32>
    %cst_45 = arith.constant 1.000000e+00 : f32
    %116 = vector.broadcast %cst_45 : f32 to vector<8x32xf32>
    %117 = arith.addf %116, %115 : vector<8x32xf32>
    %118 = arith.divf %116, %117 : vector<8x32xf32>
    %119 = vector.extract_strided_slice %112 {offsets = [0, 32], sizes = [8, 32], strides = [1, 1]} : vector<8x128xf32> to vector<8x32xf32>
    %120 = arith.negf %119 : vector<8x32xf32>
    %121 = math.exp %120 : vector<8x32xf32>
    %cst_46 = arith.constant 1.000000e+00 : f32
    %122 = vector.broadcast %cst_46 : f32 to vector<8x32xf32>
    %123 = arith.addf %122, %121 : vector<8x32xf32>
    %124 = arith.divf %122, %123 : vector<8x32xf32>
    %125 = vector.extract_strided_slice %112 {offsets = [0, 64], sizes = [8, 32], strides = [1, 1]} : vector<8x128xf32> to vector<8x32xf32>
    %126 = math.tanh %125 : vector<8x32xf32>
    %127 = vector.extract_strided_slice %112 {offsets = [0, 96], sizes = [8, 32], strides = [1, 1]} : vector<8x128xf32> to vector<8x32xf32>
    %128 = arith.negf %127 : vector<8x32xf32>
    %129 = math.exp %128 : vector<8x32xf32>
    %cst_47 = arith.constant 1.000000e+00 : f32
    %130 = vector.broadcast %cst_47 : f32 to vector<8x32xf32>
    %131 = arith.addf %130, %129 : vector<8x32xf32>
    %132 = arith.divf %130, %131 : vector<8x32xf32>
    %133 = arith.mulf %124, %77 : vector<8x32xf32>
    %134 = arith.mulf %118, %126 : vector<8x32xf32>
    %135 = arith.addf %133, %134 : vector<8x32xf32>
    %136 = math.tanh %135 : vector<8x32xf32>
    %137 = arith.mulf %132, %136 : vector<8x32xf32>
    %c16 = arith.constant 16 : index
    %c0_48 = arith.constant 0 : index
    %138 = vector.load %arg12[%c16, %c0_48] : memref<48x128xf32, #tpu.memory_space<vmem>>, vector<8x128xf32>
    %cst_49 = arith.constant dense<0.000000e+00> : vector<8x128xf32>
    %139 = tpu.matmul %107, %10, %cst_49 {dimension_numbers = #tpu.dot_dimension_numbers<[1], [0], [0], [1], [0, 0, 1, 1], [], []>} : vector<8x32xf32>, vector<32x128xf32>, vector<8x128xf32> -> vector<8x128xf32>
    %140 = arith.addf %138, %139 : vector<8x128xf32>
    %141 = vector.extract_strided_slice %140 {offsets = [0, 0], sizes = [8, 32], strides = [1, 1]} : vector<8x128xf32> to vector<8x32xf32>
    %142 = arith.negf %141 : vector<8x32xf32>
    %143 = math.exp %142 : vector<8x32xf32>
    %cst_50 = arith.constant 1.000000e+00 : f32
    %144 = vector.broadcast %cst_50 : f32 to vector<8x32xf32>
    %145 = arith.addf %144, %143 : vector<8x32xf32>
    %146 = arith.divf %144, %145 : vector<8x32xf32>
    %147 = vector.extract_strided_slice %140 {offsets = [0, 32], sizes = [8, 32], strides = [1, 1]} : vector<8x128xf32> to vector<8x32xf32>
    %148 = arith.negf %147 : vector<8x32xf32>
    %149 = math.exp %148 : vector<8x32xf32>
    %cst_51 = arith.constant 1.000000e+00 : f32
    %150 = vector.broadcast %cst_51 : f32 to vector<8x32xf32>
    %151 = arith.addf %150, %149 : vector<8x32xf32>
    %152 = arith.divf %150, %151 : vector<8x32xf32>
    %153 = vector.extract_strided_slice %140 {offsets = [0, 64], sizes = [8, 32], strides = [1, 1]} : vector<8x128xf32> to vector<8x32xf32>
    %154 = math.tanh %153 : vector<8x32xf32>
    %155 = vector.extract_strided_slice %140 {offsets = [0, 96], sizes = [8, 32], strides = [1, 1]} : vector<8x128xf32> to vector<8x32xf32>
    %156 = arith.negf %155 : vector<8x32xf32>
    %157 = math.exp %156 : vector<8x32xf32>
    %cst_52 = arith.constant 1.000000e+00 : f32
    %158 = vector.broadcast %cst_52 : f32 to vector<8x32xf32>
    %159 = arith.addf %158, %157 : vector<8x32xf32>
    %160 = arith.divf %158, %159 : vector<8x32xf32>
    %161 = arith.mulf %152, %105 : vector<8x32xf32>
    %162 = arith.mulf %146, %154 : vector<8x32xf32>
    %163 = arith.addf %161, %162 : vector<8x32xf32>
    %164 = math.tanh %163 : vector<8x32xf32>
    %165 = arith.mulf %160, %164 : vector<8x32xf32>
    %cst_53 = arith.constant dense<0.000000e+00> : vector<8x128xf32>
    %166 = tpu.matmul %165, %11, %cst_53 {dimension_numbers = #tpu.dot_dimension_numbers<[1], [0], [0], [1], [0, 0, 1, 1], [], []>} : vector<8x32xf32>, vector<32x128xf32>, vector<8x128xf32> -> vector<8x128xf32>
    %cst_54 = arith.constant dense<0.000000e+00> : vector<8x128xf32>
    %167 = tpu.matmul %137, %12, %cst_54 {dimension_numbers = #tpu.dot_dimension_numbers<[1], [0], [0], [1], [0, 0, 1, 1], [], []>} : vector<8x32xf32>, vector<32x128xf32>, vector<8x128xf32> -> vector<8x128xf32>
    %168 = arith.addf %166, %167 : vector<8x128xf32>
    %169 = vector.broadcast %13 : vector<1x128xf32> to vector<8x128xf32>
    %170 = arith.addf %168, %169 : vector<8x128xf32>
    %171 = vector.extract_strided_slice %170 {offsets = [0, 0], sizes = [8, 32], strides = [1, 1]} : vector<8x128xf32> to vector<8x32xf32>
    %172 = arith.negf %171 : vector<8x32xf32>
    %173 = math.exp %172 : vector<8x32xf32>
    %cst_55 = arith.constant 1.000000e+00 : f32
    %174 = vector.broadcast %cst_55 : f32 to vector<8x32xf32>
    %175 = arith.addf %174, %173 : vector<8x32xf32>
    %176 = arith.divf %174, %175 : vector<8x32xf32>
    %177 = vector.extract_strided_slice %170 {offsets = [0, 32], sizes = [8, 32], strides = [1, 1]} : vector<8x128xf32> to vector<8x32xf32>
    %178 = arith.negf %177 : vector<8x32xf32>
    %179 = math.exp %178 : vector<8x32xf32>
    %cst_56 = arith.constant 1.000000e+00 : f32
    %180 = vector.broadcast %cst_56 : f32 to vector<8x32xf32>
    %181 = arith.addf %180, %179 : vector<8x32xf32>
    %182 = arith.divf %180, %181 : vector<8x32xf32>
    %183 = vector.extract_strided_slice %170 {offsets = [0, 64], sizes = [8, 32], strides = [1, 1]} : vector<8x128xf32> to vector<8x32xf32>
    %184 = math.tanh %183 : vector<8x32xf32>
    %185 = vector.extract_strided_slice %170 {offsets = [0, 96], sizes = [8, 32], strides = [1, 1]} : vector<8x128xf32> to vector<8x32xf32>
    %186 = arith.negf %185 : vector<8x32xf32>
    %187 = math.exp %186 : vector<8x32xf32>
    %cst_57 = arith.constant 1.000000e+00 : f32
    %188 = vector.broadcast %cst_57 : f32 to vector<8x32xf32>
    %189 = arith.addf %188, %187 : vector<8x32xf32>
    %190 = arith.divf %188, %189 : vector<8x32xf32>
    %191 = arith.mulf %182, %135 : vector<8x32xf32>
    %192 = arith.mulf %176, %184 : vector<8x32xf32>
    %193 = arith.addf %191, %192 : vector<8x32xf32>
    %194 = math.tanh %193 : vector<8x32xf32>
    %195 = arith.mulf %190, %194 : vector<8x32xf32>
    %c24 = arith.constant 24 : index
    %c0_58 = arith.constant 0 : index
    %196 = vector.load %arg12[%c24, %c0_58] : memref<48x128xf32, #tpu.memory_space<vmem>>, vector<8x128xf32>
    %cst_59 = arith.constant dense<0.000000e+00> : vector<8x128xf32>
    %197 = tpu.matmul %165, %10, %cst_59 {dimension_numbers = #tpu.dot_dimension_numbers<[1], [0], [0], [1], [0, 0, 1, 1], [], []>} : vector<8x32xf32>, vector<32x128xf32>, vector<8x128xf32> -> vector<8x128xf32>
    %198 = arith.addf %196, %197 : vector<8x128xf32>
    %199 = vector.extract_strided_slice %198 {offsets = [0, 0], sizes = [8, 32], strides = [1, 1]} : vector<8x128xf32> to vector<8x32xf32>
    %200 = arith.negf %199 : vector<8x32xf32>
    %201 = math.exp %200 : vector<8x32xf32>
    %cst_60 = arith.constant 1.000000e+00 : f32
    %202 = vector.broadcast %cst_60 : f32 to vector<8x32xf32>
    %203 = arith.addf %202, %201 : vector<8x32xf32>
    %204 = arith.divf %202, %203 : vector<8x32xf32>
    %205 = vector.extract_strided_slice %198 {offsets = [0, 32], sizes = [8, 32], strides = [1, 1]} : vector<8x128xf32> to vector<8x32xf32>
    %206 = arith.negf %205 : vector<8x32xf32>
    %207 = math.exp %206 : vector<8x32xf32>
    %cst_61 = arith.constant 1.000000e+00 : f32
    %208 = vector.broadcast %cst_61 : f32 to vector<8x32xf32>
    %209 = arith.addf %208, %207 : vector<8x32xf32>
    %210 = arith.divf %208, %209 : vector<8x32xf32>
    %211 = vector.extract_strided_slice %198 {offsets = [0, 64], sizes = [8, 32], strides = [1, 1]} : vector<8x128xf32> to vector<8x32xf32>
    %212 = math.tanh %211 : vector<8x32xf32>
    %213 = vector.extract_strided_slice %198 {offsets = [0, 96], sizes = [8, 32], strides = [1, 1]} : vector<8x128xf32> to vector<8x32xf32>
    %214 = arith.negf %213 : vector<8x32xf32>
    %215 = math.exp %214 : vector<8x32xf32>
    %cst_62 = arith.constant 1.000000e+00 : f32
    %216 = vector.broadcast %cst_62 : f32 to vector<8x32xf32>
    %217 = arith.addf %216, %215 : vector<8x32xf32>
    %218 = arith.divf %216, %217 : vector<8x32xf32>
    %219 = arith.mulf %210, %163 : vector<8x32xf32>
    %220 = arith.mulf %204, %212 : vector<8x32xf32>
    %221 = arith.addf %219, %220 : vector<8x32xf32>
    %222 = math.tanh %221 : vector<8x32xf32>
    %223 = arith.mulf %218, %222 : vector<8x32xf32>
    %cst_63 = arith.constant dense<0.000000e+00> : vector<8x128xf32>
    %224 = tpu.matmul %223, %11, %cst_63 {dimension_numbers = #tpu.dot_dimension_numbers<[1], [0], [0], [1], [0, 0, 1, 1], [], []>} : vector<8x32xf32>, vector<32x128xf32>, vector<8x128xf32> -> vector<8x128xf32>
    %cst_64 = arith.constant dense<0.000000e+00> : vector<8x128xf32>
    %225 = tpu.matmul %195, %12, %cst_64 {dimension_numbers = #tpu.dot_dimension_numbers<[1], [0], [0], [1], [0, 0, 1, 1], [], []>} : vector<8x32xf32>, vector<32x128xf32>, vector<8x128xf32> -> vector<8x128xf32>
    %226 = arith.addf %224, %225 : vector<8x128xf32>
    %227 = vector.broadcast %13 : vector<1x128xf32> to vector<8x128xf32>
    %228 = arith.addf %226, %227 : vector<8x128xf32>
    %229 = vector.extract_strided_slice %228 {offsets = [0, 0], sizes = [8, 32], strides = [1, 1]} : vector<8x128xf32> to vector<8x32xf32>
    %230 = arith.negf %229 : vector<8x32xf32>
    %231 = math.exp %230 : vector<8x32xf32>
    %cst_65 = arith.constant 1.000000e+00 : f32
    %232 = vector.broadcast %cst_65 : f32 to vector<8x32xf32>
    %233 = arith.addf %232, %231 : vector<8x32xf32>
    %234 = arith.divf %232, %233 : vector<8x32xf32>
    %235 = vector.extract_strided_slice %228 {offsets = [0, 32], sizes = [8, 32], strides = [1, 1]} : vector<8x128xf32> to vector<8x32xf32>
    %236 = arith.negf %235 : vector<8x32xf32>
    %237 = math.exp %236 : vector<8x32xf32>
    %cst_66 = arith.constant 1.000000e+00 : f32
    %238 = vector.broadcast %cst_66 : f32 to vector<8x32xf32>
    %239 = arith.addf %238, %237 : vector<8x32xf32>
    %240 = arith.divf %238, %239 : vector<8x32xf32>
    %241 = vector.extract_strided_slice %228 {offsets = [0, 64], sizes = [8, 32], strides = [1, 1]} : vector<8x128xf32> to vector<8x32xf32>
    %242 = math.tanh %241 : vector<8x32xf32>
    %243 = vector.extract_strided_slice %228 {offsets = [0, 96], sizes = [8, 32], strides = [1, 1]} : vector<8x128xf32> to vector<8x32xf32>
    %244 = arith.negf %243 : vector<8x32xf32>
    %245 = math.exp %244 : vector<8x32xf32>
    %cst_67 = arith.constant 1.000000e+00 : f32
    %246 = vector.broadcast %cst_67 : f32 to vector<8x32xf32>
    %247 = arith.addf %246, %245 : vector<8x32xf32>
    %248 = arith.divf %246, %247 : vector<8x32xf32>
    %249 = arith.mulf %240, %193 : vector<8x32xf32>
    %250 = arith.mulf %234, %242 : vector<8x32xf32>
    %251 = arith.addf %249, %250 : vector<8x32xf32>
    %252 = math.tanh %251 : vector<8x32xf32>
    %253 = arith.mulf %248, %252 : vector<8x32xf32>
    %c32 = arith.constant 32 : index
    %c0_68 = arith.constant 0 : index
    %254 = vector.load %arg12[%c32, %c0_68] : memref<48x128xf32, #tpu.memory_space<vmem>>, vector<8x128xf32>
    %cst_69 = arith.constant dense<0.000000e+00> : vector<8x128xf32>
    %255 = tpu.matmul %223, %10, %cst_69 {dimension_numbers = #tpu.dot_dimension_numbers<[1], [0], [0], [1], [0, 0, 1, 1], [], []>} : vector<8x32xf32>, vector<32x128xf32>, vector<8x128xf32> -> vector<8x128xf32>
    %256 = arith.addf %254, %255 : vector<8x128xf32>
    %257 = vector.extract_strided_slice %256 {offsets = [0, 0], sizes = [8, 32], strides = [1, 1]} : vector<8x128xf32> to vector<8x32xf32>
    %258 = arith.negf %257 : vector<8x32xf32>
    %259 = math.exp %258 : vector<8x32xf32>
    %cst_70 = arith.constant 1.000000e+00 : f32
    %260 = vector.broadcast %cst_70 : f32 to vector<8x32xf32>
    %261 = arith.addf %260, %259 : vector<8x32xf32>
    %262 = arith.divf %260, %261 : vector<8x32xf32>
    %263 = vector.extract_strided_slice %256 {offsets = [0, 32], sizes = [8, 32], strides = [1, 1]} : vector<8x128xf32> to vector<8x32xf32>
    %264 = arith.negf %263 : vector<8x32xf32>
    %265 = math.exp %264 : vector<8x32xf32>
    %cst_71 = arith.constant 1.000000e+00 : f32
    %266 = vector.broadcast %cst_71 : f32 to vector<8x32xf32>
    %267 = arith.addf %266, %265 : vector<8x32xf32>
    %268 = arith.divf %266, %267 : vector<8x32xf32>
    %269 = vector.extract_strided_slice %256 {offsets = [0, 64], sizes = [8, 32], strides = [1, 1]} : vector<8x128xf32> to vector<8x32xf32>
    %270 = math.tanh %269 : vector<8x32xf32>
    %271 = vector.extract_strided_slice %256 {offsets = [0, 96], sizes = [8, 32], strides = [1, 1]} : vector<8x128xf32> to vector<8x32xf32>
    %272 = arith.negf %271 : vector<8x32xf32>
    %273 = math.exp %272 : vector<8x32xf32>
    %cst_72 = arith.constant 1.000000e+00 : f32
    %274 = vector.broadcast %cst_72 : f32 to vector<8x32xf32>
    %275 = arith.addf %274, %273 : vector<8x32xf32>
    %276 = arith.divf %274, %275 : vector<8x32xf32>
    %277 = arith.mulf %268, %221 : vector<8x32xf32>
    %278 = arith.mulf %262, %270 : vector<8x32xf32>
    %279 = arith.addf %277, %278 : vector<8x32xf32>
    %280 = math.tanh %279 : vector<8x32xf32>
    %281 = arith.mulf %276, %280 : vector<8x32xf32>
    %cst_73 = arith.constant dense<0.000000e+00> : vector<8x128xf32>
    %282 = tpu.matmul %281, %11, %cst_73 {dimension_numbers = #tpu.dot_dimension_numbers<[1], [0], [0], [1], [0, 0, 1, 1], [], []>} : vector<8x32xf32>, vector<32x128xf32>, vector<8x128xf32> -> vector<8x128xf32>
    %cst_74 = arith.constant dense<0.000000e+00> : vector<8x128xf32>
    %283 = tpu.matmul %253, %12, %cst_74 {dimension_numbers = #tpu.dot_dimension_numbers<[1], [0], [0], [1], [0, 0, 1, 1], [], []>} : vector<8x32xf32>, vector<32x128xf32>, vector<8x128xf32> -> vector<8x128xf32>
    %284 = arith.addf %282, %283 : vector<8x128xf32>
    %285 = vector.broadcast %13 : vector<1x128xf32> to vector<8x128xf32>
    %286 = arith.addf %284, %285 : vector<8x128xf32>
    %287 = vector.extract_strided_slice %286 {offsets = [0, 0], sizes = [8, 32], strides = [1, 1]} : vector<8x128xf32> to vector<8x32xf32>
    %288 = arith.negf %287 : vector<8x32xf32>
    %289 = math.exp %288 : vector<8x32xf32>
    %cst_75 = arith.constant 1.000000e+00 : f32
    %290 = vector.broadcast %cst_75 : f32 to vector<8x32xf32>
    %291 = arith.addf %290, %289 : vector<8x32xf32>
    %292 = arith.divf %290, %291 : vector<8x32xf32>
    %293 = vector.extract_strided_slice %286 {offsets = [0, 32], sizes = [8, 32], strides = [1, 1]} : vector<8x128xf32> to vector<8x32xf32>
    %294 = arith.negf %293 : vector<8x32xf32>
    %295 = math.exp %294 : vector<8x32xf32>
    %cst_76 = arith.constant 1.000000e+00 : f32
    %296 = vector.broadcast %cst_76 : f32 to vector<8x32xf32>
    %297 = arith.addf %296, %295 : vector<8x32xf32>
    %298 = arith.divf %296, %297 : vector<8x32xf32>
    %299 = vector.extract_strided_slice %286 {offsets = [0, 64], sizes = [8, 32], strides = [1, 1]} : vector<8x128xf32> to vector<8x32xf32>
    %300 = math.tanh %299 : vector<8x32xf32>
    %301 = vector.extract_strided_slice %286 {offsets = [0, 96], sizes = [8, 32], strides = [1, 1]} : vector<8x128xf32> to vector<8x32xf32>
    %302 = arith.negf %301 : vector<8x32xf32>
    %303 = math.exp %302 : vector<8x32xf32>
    %cst_77 = arith.constant 1.000000e+00 : f32
    %304 = vector.broadcast %cst_77 : f32 to vector<8x32xf32>
    %305 = arith.addf %304, %303 : vector<8x32xf32>
    %306 = arith.divf %304, %305 : vector<8x32xf32>
    %307 = arith.mulf %298, %251 : vector<8x32xf32>
    %308 = arith.mulf %292, %300 : vector<8x32xf32>
    %309 = arith.addf %307, %308 : vector<8x32xf32>
    %310 = math.tanh %309 : vector<8x32xf32>
    %311 = arith.mulf %306, %310 : vector<8x32xf32>
    %c40 = arith.constant 40 : index
    %c0_78 = arith.constant 0 : index
    %312 = vector.load %arg12[%c40, %c0_78] : memref<48x128xf32, #tpu.memory_space<vmem>>, vector<8x128xf32>
    %cst_79 = arith.constant dense<0.000000e+00> : vector<8x128xf32>
    %313 = tpu.matmul %281, %10, %cst_79 {dimension_numbers = #tpu.dot_dimension_numbers<[1], [0], [0], [1], [0, 0, 1, 1], [], []>} : vector<8x32xf32>, vector<32x128xf32>, vector<8x128xf32> -> vector<8x128xf32>
    %314 = arith.addf %312, %313 : vector<8x128xf32>
    %315 = vector.extract_strided_slice %314 {offsets = [0, 0], sizes = [8, 32], strides = [1, 1]} : vector<8x128xf32> to vector<8x32xf32>
    %316 = arith.negf %315 : vector<8x32xf32>
    %317 = math.exp %316 : vector<8x32xf32>
    %cst_80 = arith.constant 1.000000e+00 : f32
    %318 = vector.broadcast %cst_80 : f32 to vector<8x32xf32>
    %319 = arith.addf %318, %317 : vector<8x32xf32>
    %320 = arith.divf %318, %319 : vector<8x32xf32>
    %321 = vector.extract_strided_slice %314 {offsets = [0, 32], sizes = [8, 32], strides = [1, 1]} : vector<8x128xf32> to vector<8x32xf32>
    %322 = arith.negf %321 : vector<8x32xf32>
    %323 = math.exp %322 : vector<8x32xf32>
    %cst_81 = arith.constant 1.000000e+00 : f32
    %324 = vector.broadcast %cst_81 : f32 to vector<8x32xf32>
    %325 = arith.addf %324, %323 : vector<8x32xf32>
    %326 = arith.divf %324, %325 : vector<8x32xf32>
    %327 = vector.extract_strided_slice %314 {offsets = [0, 64], sizes = [8, 32], strides = [1, 1]} : vector<8x128xf32> to vector<8x32xf32>
    %328 = math.tanh %327 : vector<8x32xf32>
    %329 = vector.extract_strided_slice %314 {offsets = [0, 96], sizes = [8, 32], strides = [1, 1]} : vector<8x128xf32> to vector<8x32xf32>
    %330 = arith.negf %329 : vector<8x32xf32>
    %331 = math.exp %330 : vector<8x32xf32>
    %cst_82 = arith.constant 1.000000e+00 : f32
    %332 = vector.broadcast %cst_82 : f32 to vector<8x32xf32>
    %333 = arith.addf %332, %331 : vector<8x32xf32>
    %334 = arith.divf %332, %333 : vector<8x32xf32>
    %335 = arith.mulf %326, %279 : vector<8x32xf32>
    %336 = arith.mulf %320, %328 : vector<8x32xf32>
    %337 = arith.addf %335, %336 : vector<8x32xf32>
    %338 = math.tanh %337 : vector<8x32xf32>
    %339 = arith.mulf %334, %338 : vector<8x32xf32>
    %cst_83 = arith.constant dense<0.000000e+00> : vector<8x128xf32>
    %340 = tpu.matmul %339, %11, %cst_83 {dimension_numbers = #tpu.dot_dimension_numbers<[1], [0], [0], [1], [0, 0, 1, 1], [], []>} : vector<8x32xf32>, vector<32x128xf32>, vector<8x128xf32> -> vector<8x128xf32>
    %cst_84 = arith.constant dense<0.000000e+00> : vector<8x128xf32>
    %341 = tpu.matmul %311, %12, %cst_84 {dimension_numbers = #tpu.dot_dimension_numbers<[1], [0], [0], [1], [0, 0, 1, 1], [], []>} : vector<8x32xf32>, vector<32x128xf32>, vector<8x128xf32> -> vector<8x128xf32>
    %342 = arith.addf %340, %341 : vector<8x128xf32>
    %343 = vector.broadcast %13 : vector<1x128xf32> to vector<8x128xf32>
    %344 = arith.addf %342, %343 : vector<8x128xf32>
    %345 = vector.extract_strided_slice %344 {offsets = [0, 0], sizes = [8, 32], strides = [1, 1]} : vector<8x128xf32> to vector<8x32xf32>
    %346 = arith.negf %345 : vector<8x32xf32>
    %347 = math.exp %346 : vector<8x32xf32>
    %cst_85 = arith.constant 1.000000e+00 : f32
    %348 = vector.broadcast %cst_85 : f32 to vector<8x32xf32>
    %349 = arith.addf %348, %347 : vector<8x32xf32>
    %350 = arith.divf %348, %349 : vector<8x32xf32>
    %351 = vector.extract_strided_slice %344 {offsets = [0, 32], sizes = [8, 32], strides = [1, 1]} : vector<8x128xf32> to vector<8x32xf32>
    %352 = arith.negf %351 : vector<8x32xf32>
    %353 = math.exp %352 : vector<8x32xf32>
    %cst_86 = arith.constant 1.000000e+00 : f32
    %354 = vector.broadcast %cst_86 : f32 to vector<8x32xf32>
    %355 = arith.addf %354, %353 : vector<8x32xf32>
    %356 = arith.divf %354, %355 : vector<8x32xf32>
    %357 = vector.extract_strided_slice %344 {offsets = [0, 64], sizes = [8, 32], strides = [1, 1]} : vector<8x128xf32> to vector<8x32xf32>
    %358 = math.tanh %357 : vector<8x32xf32>
    %359 = vector.extract_strided_slice %344 {offsets = [0, 96], sizes = [8, 32], strides = [1, 1]} : vector<8x128xf32> to vector<8x32xf32>
    %360 = arith.negf %359 : vector<8x32xf32>
    %361 = math.exp %360 : vector<8x32xf32>
    %cst_87 = arith.constant 1.000000e+00 : f32
    %362 = vector.broadcast %cst_87 : f32 to vector<8x32xf32>
    %363 = arith.addf %362, %361 : vector<8x32xf32>
    %364 = arith.divf %362, %363 : vector<8x32xf32>
    %365 = arith.mulf %356, %309 : vector<8x32xf32>
    %366 = arith.mulf %350, %358 : vector<8x32xf32>
    %367 = arith.addf %365, %366 : vector<8x32xf32>
    %368 = math.tanh %367 : vector<8x32xf32>
    %369 = arith.mulf %364, %368 : vector<8x32xf32>
    %c0_88 = arith.constant 0 : index
    %c0_89 = arith.constant 0 : index
    %c0_90 = arith.constant 0 : index
    %370 = vector.load %arg13[%c0_88, %c0_89, %c0_90] : memref<2x8x32xf32, #tpu.memory_space<vmem>>, vector<1x8x32xf32>
    %371 = vector.shape_cast %370 : vector<1x8x32xf32> to vector<8x32xf32>
    %372 = vector.shape_cast %339 : vector<8x32xf32> to vector<1x8x32xf32>
    tpu.vector_store %arg13[%c0_88, %c0_89, %c0_90], %372 {strides = array<i32>} : memref<2x8x32xf32, #tpu.memory_space<vmem>>, vector<1x8x32xf32>,
    %c0_91 = arith.constant 0 : index
    %c0_92 = arith.constant 0 : index
    %c0_93 = arith.constant 0 : index
    %373 = vector.load %arg14[%c0_91, %c0_92, %c0_93] : memref<2x8x32xf32, #tpu.memory_space<vmem>>, vector<1x8x32xf32>
    %374 = vector.shape_cast %373 : vector<1x8x32xf32> to vector<8x32xf32>
    %375 = vector.shape_cast %337 : vector<8x32xf32> to vector<1x8x32xf32>
    tpu.vector_store %arg14[%c0_91, %c0_92, %c0_93], %375 {strides = array<i32>} : memref<2x8x32xf32, #tpu.memory_space<vmem>>, vector<1x8x32xf32>,
    %c1_94 = arith.constant 1 : index
    %c0_95 = arith.constant 0 : index
    %c0_96 = arith.constant 0 : index
    %376 = vector.load %arg13[%c1_94, %c0_95, %c0_96] : memref<2x8x32xf32, #tpu.memory_space<vmem>>, vector<1x8x32xf32>
    %377 = vector.shape_cast %376 : vector<1x8x32xf32> to vector<8x32xf32>
    %378 = vector.shape_cast %369 : vector<8x32xf32> to vector<1x8x32xf32>
    tpu.vector_store %arg13[%c1_94, %c0_95, %c0_96], %378 {strides = array<i32>} : memref<2x8x32xf32, #tpu.memory_space<vmem>>, vector<1x8x32xf32>,
    %c1_97 = arith.constant 1 : index
    %c0_98 = arith.constant 0 : index
    %c0_99 = arith.constant 0 : index
    %379 = vector.load %arg14[%c1_97, %c0_98, %c0_99] : memref<2x8x32xf32, #tpu.memory_space<vmem>>, vector<1x8x32xf32>
    %380 = vector.shape_cast %379 : vector<1x8x32xf32> to vector<8x32xf32>
    %381 = vector.shape_cast %367 : vector<8x32xf32> to vector<1x8x32xf32>
    tpu.vector_store %arg14[%c1_97, %c0_98, %c0_99], %381 {strides = array<i32>} : memref<2x8x32xf32, #tpu.memory_space<vmem>>, vector<1x8x32xf32>,
    %c0_i32_100 = arith.constant 0 : i32
    %382 = arith.cmpi eq, %arg0, %c0_i32_100 : i32
    %383 = arith.extui %382 : i1 to i32
    %c0_i32_101 = arith.constant 0 : i32
    %384 = arith.cmpi ne, %383, %c0_i32_101 : i32
    scf.if %384 {
      %c0_102 = arith.constant 0 : index
      %c0_103 = arith.constant 0 : index
      %c0_104 = arith.constant 0 : index
      %385 = vector.load %arg10[%c0_102, %c0_103, %c0_104] : memref<2x8x32xf32, #tpu.memory_space<vmem>>, vector<1x8x32xf32>
      %386 = vector.shape_cast %385 : vector<1x8x32xf32> to vector<8x32xf32>
      %387 = vector.shape_cast %339 : vector<8x32xf32> to vector<1x8x32xf32>
      tpu.vector_store %arg10[%c0_102, %c0_103, %c0_104], %387 {strides = array<i32>} : memref<2x8x32xf32, #tpu.memory_space<vmem>>, vector<1x8x32xf32>,
      %c0_105 = arith.constant 0 : index
      %c0_106 = arith.constant 0 : index
      %c0_107 = arith.constant 0 : index
      %388 = vector.load %arg11[%c0_105, %c0_106, %c0_107] : memref<2x8x32xf32, #tpu.memory_space<vmem>>, vector<1x8x32xf32>
      %389 = vector.shape_cast %388 : vector<1x8x32xf32> to vector<8x32xf32>
      %390 = vector.shape_cast %337 : vector<8x32xf32> to vector<1x8x32xf32>
      tpu.vector_store %arg11[%c0_105, %c0_106, %c0_107], %390 {strides = array<i32>} : memref<2x8x32xf32, #tpu.memory_space<vmem>>, vector<1x8x32xf32>,
      %c1_108 = arith.constant 1 : index
      %c0_109 = arith.constant 0 : index
      %c0_110 = arith.constant 0 : index
      %391 = vector.load %arg10[%c1_108, %c0_109, %c0_110] : memref<2x8x32xf32, #tpu.memory_space<vmem>>, vector<1x8x32xf32>
      %392 = vector.shape_cast %391 : vector<1x8x32xf32> to vector<8x32xf32>
      %393 = vector.shape_cast %369 : vector<8x32xf32> to vector<1x8x32xf32>
      tpu.vector_store %arg10[%c1_108, %c0_109, %c0_110], %393 {strides = array<i32>} : memref<2x8x32xf32, #tpu.memory_space<vmem>>, vector<1x8x32xf32>,
      %c1_111 = arith.constant 1 : index
      %c0_112 = arith.constant 0 : index
      %c0_113 = arith.constant 0 : index
      %394 = vector.load %arg11[%c1_111, %c0_112, %c0_113] : memref<2x8x32xf32, #tpu.memory_space<vmem>>, vector<1x8x32xf32>
      %395 = vector.shape_cast %394 : vector<1x8x32xf32> to vector<8x32xf32>
      %396 = vector.shape_cast %367 : vector<8x32xf32> to vector<1x8x32xf32>
      tpu.vector_store %arg11[%c1_111, %c0_112, %c0_113], %396 {strides = array<i32>} : memref<2x8x32xf32, #tpu.memory_space<vmem>>, vector<1x8x32xf32>,
    } else {
    }
    return
  }
  func.func @transform_0(%arg0: i32) -> (i32, i32) {
    %c0_i32 = arith.constant 0 : i32
    %c0_i32_0 = arith.constant 0 : i32
    return %arg0, %c0_i32 : i32, i32
  }
  func.func @transform_1(%arg0: i32) -> (i32, i32, i32) {
    %c0_i32 = arith.constant 0 : i32
    %c0_i32_0 = arith.constant 0 : i32
    %c0_i32_1 = arith.constant 0 : i32
    %c0_i32_2 = arith.constant 0 : i32
    return %c0_i32, %c0_i32_0, %c0_i32_1 : i32, i32, i32
  }
  func.func @transform_2(%arg0: i32) -> (i32, i32, i32) {
    %c0_i32 = arith.constant 0 : i32
    %c0_i32_0 = arith.constant 0 : i32
    %c0_i32_1 = arith.constant 0 : i32
    %c0_i32_2 = arith.constant 0 : i32
    return %c0_i32, %c0_i32_0, %c0_i32_1 : i32, i32, i32
  }
  func.func @transform_3(%arg0: i32) -> (i32, i32) {
    %c0_i32 = arith.constant 0 : i32
    %c0_i32_0 = arith.constant 0 : i32
    %c0_i32_1 = arith.constant 0 : i32
    return %c0_i32, %c0_i32_0 : i32, i32
  }
  func.func @transform_4(%arg0: i32) -> (i32, i32) {
    %c0_i32 = arith.constant 0 : i32
    %c0_i32_0 = arith.constant 0 : i32
    %c0_i32_1 = arith.constant 0 : i32
    return %c0_i32, %c0_i32_0 : i32, i32
  }
  func.func @transform_5(%arg0: i32) -> (i32, i32) {
    %c0_i32 = arith.constant 0 : i32
    %c0_i32_0 = arith.constant 0 : i32
    %c0_i32_1 = arith.constant 0 : i32
    return %c0_i32, %c0_i32_0 : i32, i32
  }
  func.func @transform_6(%arg0: i32) -> (i32, i32) {
    %c0_i32 = arith.constant 0 : i32
    %c0_i32_0 = arith.constant 0 : i32
    %c0_i32_1 = arith.constant 0 : i32
    return %c0_i32, %c0_i32_0 : i32, i32
  }
  func.func @transform_7(%arg0: i32) -> (i32, i32) {
    %c0_i32 = arith.constant 0 : i32
    %c0_i32_0 = arith.constant 0 : i32
    %c0_i32_1 = arith.constant 0 : i32
    return %c0_i32, %c0_i32_0 : i32, i32
  }
  func.func @transform_8(%arg0: i32) -> (i32, i32) {
    %c0_i32 = arith.constant 0 : i32
    %c0_i32_0 = arith.constant 0 : i32
    %c0_i32_1 = arith.constant 0 : i32
    return %c0_i32, %c0_i32_0 : i32, i32
  }
  func.func @transform_9(%arg0: i32) -> (i32, i32, i32) {
    %c0_i32 = arith.constant 0 : i32
    %c0_i32_0 = arith.constant 0 : i32
    %c0_i32_1 = arith.constant 0 : i32
    %c0_i32_2 = arith.constant 0 : i32
    return %c0_i32, %c0_i32_0, %c0_i32_1 : i32, i32, i32
  }
  func.func @transform_10(%arg0: i32) -> (i32, i32, i32) {
    %c0_i32 = arith.constant 0 : i32
    %c0_i32_0 = arith.constant 0 : i32
    %c0_i32_1 = arith.constant 0 : i32
    %c0_i32_2 = arith.constant 0 : i32
    return %c0_i32, %c0_i32_0, %c0_i32_1 : i32, i32, i32
  }
}

</mosaic_0001>

<bundles_post_ra>
// kernel: tpu_custom_call.1
= control target key start
LH: loop header
LB: loop body
LE: loop exit
PB: predicated region body
PF: predicated region fallthrough
CT: control target
= control target key end

     0   :  { %7 = vsyncpa [#allocation3], 0  ;;  %s690_s0 = inlined_call_operand.hbm [shape: f32[16,128], index: 0, kind: input, shape index: {}]   ;;  %s691_s1 = inlined_call_operand.hbm [shape: f32[8,128], index: 1, kind: input, shape index: {}]   ;;  %s692_s2 = inlined_call_operand.hbm [shape: f32[16,128], index: 2, kind: output, shape index: {}]  }
   0x1   :  { %9 = vsyncpa [#allocation3 + $0x1], 0 }
   0x2   :  { %10 = vsyncpa [#allocation6], 0 }
   0x3   :  { %11 = vsyncpa [#allocation4], 0 }
   0x4   :  { %13 = vsyncpa [#allocation4 + $0x1], 0  ;;  %s489_s9 = smov 0   ;;  %s491_s10 = smov 0  }
   0x5   :  { %s493_s11 = smov 0   ;;  %s495_s12 = smov 0  }
   0x6 LB: > { %s510_s13 = sadd.s32 4294967295, %s469_s12   ;;  %s270_s14 = sadd.s32 4294967294, %s469_s12   ;;  %s469_s12 = sphi %s495_s12, %s716_s12   ;;  %s465_s11 = sphi %s493_s11, %s715_s11   ;;  %s461_s10 = sphi %s491_s10, %s714_s10   ;;  %s457_s9 = sphi %s489_s9, %s713_s9  }
   0x7   : > { %p39_p0 = scmp.ne.s32.totalorder %s461_s10, %s457_s9  ;;  %p693_p1 = scmp.eq.s32.totalorder %s510_s13, 0 }
   0x8   : > { %p90_p3 = scmp.eq.s32.totalorder %s270_s14, 1  ;;  %p271_p5 = scmp.ge.s32.totalorder %s469_s12, 1 }
   0x9   : > { %p519_p4 = por %p693_p1, %p39_p0  ;;  %p97_p7 = scmp.lt.s32.totalorder %s469_s12, 3 }
   0xa   : > { %p524_p6 = por %p90_p3, %p39_p0  ;;  %s471_s18 = smov [#allocation5]  }
   0xb   : > { %s696_s15 = scalar_select %p519_p4, 1, 0 }
   0xc   : > { %s697_s16 = scalar_select %p524_p6, 1, 0 }
   0xd   : > { %p529_p8 = pnand %p271_p5, %p97_p7  ;;  %s110_s19 = sshll.u32 %s471_s18, 4  ;;  %s111_s19 = int_to_ptr.vmem [resolvable:$true] %s110_s19 }
   0xe   : > { %s537_s20 = sadd.s32 1, %s469_s12   ;;  %s26_s24 = sadd.s32 1, %s465_s11 }
   0xf   : > { %s698_s17 = scalar_select %p529_p8, 1, 0 }
  0x10   : > { %p292_p10 = pneg %p529_p8  ;;  %s23_s22 = ssub.s32 %s469_s12, %s537_s20 }
  0x11   : > { %p547_p12 = scmp.eq.s32.totalorder %s23_s22, 0  ;;  %s341_s27 = scalar_lea.hbm %s691_s1, 128 }
  0x12   : > { %p541_p11 = pnand %p292_p10, %p693_p1  ;;  %p342_p0 = scmp.ne.s32.totalorder %s691_s1, %s341_s27 }
  0x13   : > { %s700_s23 = scalar_select %p547_p12, 1, 0 }
  0x14   : > { %p343_p3 = pneg %p541_p11  ;;  %p348_p10 = scmp.lt.u32.totalorder %s341_s27, %s691_s1 }
  0x16   : > { %p344_p5 = pnand %p343_p3, %p342_p0 }
  0x18   : > { %p345_p7 = pneg %p344_p5 }
  0x1a   : > { %p350_p9 = pnand %p348_p10, %p345_p7 }
  0x1c   : > { %353 = shalt.err (!%p350_p9)
}
  0x1d   : > { %s354_s4 = scalar_lea.vmem %s111_s19, 128  ;;  %p362_p6 = scmp.lt.s32.totalorder %s111_s19, %s111_s19 }
  0x1e   : > { %p355_p1 = scmp.ne.s32.totalorder %s111_s19, %s354_s4  ;;  %p363_p4 = scmp.lt.s32.totalorder %s354_s4, %s354_s4 }
  0x20   : > { %p357_p2 = pnand %p355_p1, %p343_p3  ;;  %p364_p8 = por %p363_p4, %p362_p6 }
  0x22   : > { %p358_p13 = pneg %p357_p2 }
  0x24   : > { %p365_p12 = pnand %p364_p8, %p358_p13 }
  0x26   : > { %368 = shalt.err (!%p365_p12)
}
  0x27   : > { %295 = dma.hbm_to_vmem [thread:$0]  (!%p541_p11), %s691_s1, 128, %s111_s19, [#allocation6]  }
  0x28   : > { %p701_p1 = scmp.ne.s32.totalorder %s700_s23, 0  ;;  %p34_p2 = scmp.eq.s32.totalorder %s469_s12, 0 }
  0x29   : > { %p702_p4 = scmp.ne.s32.totalorder %s465_s11, %s461_s10  ;;  %p703_p6 = scmp.eq.s32.totalorder %s510_s13, 1 }
  0x2a   : > { %s573_s7 = scalar_select %p701_p1, %s465_s11, %s26_s24  }
  0x2b   : > { %p581_p8 = por %p703_p6, %p702_p4  ;;  %p305_p9 = scmp.lt.s32.totalorder %s469_s12, 2 }
  0x2c   : > { %s121_s14 = sand.u32 1, %s465_s11   ;;  %p705_p12 = pmov %p702_p4 }
  0x2d   : > { %s274_s18 = sshll.u32 %s121_s14, 3  ;;  %s275_s21 = sshll.u32 %s469_s12, 7 }
  0x2e   : > { %p35_p13 = por %p34_p2, %p705_p12  ;;  %s594_s19 = scalar_lea.hbm %s690_s0, %s275_s21 }
  0x2f   : > { %s125_s23 = scalar_lea.vmem [#allocation2], %s274_s18  ;;  %s122_s27 = scalar_lea.sflag [#allocation3], %s121_s14 }
  0x30   : > { %s132_s24 = sshll.u32 %s125_s23, 4  ;;  %p596_p11 = pnand %p305_p9, %p35_p13  ;;  %s600_s24 = int_to_ptr.vmem [resolvable:$true] %s132_s24 }
  0x31   : > { %s369_s28 = scalar_lea.hbm %s594_s19, 128  ;;  %s374_s3 = scalar_lea.hbm %s690_s0, 256 }
  0x32   : > { %p370_p0 = scmp.ne.s32.totalorder %s594_s19, %s369_s28  ;;  %p371_p3 = pneg %p596_p11 }
  0x33   : > { %p375_p10 = scmp.lt.u32.totalorder %s594_s19, %s690_s0  ;;  %p376_p1 = scmp.lt.u32.totalorder %s374_s3, %s369_s28 }
  0x34   : > { %p372_p5 = pnand %p371_p3, %p370_p0  ;;  %p378_p4 = scmp.lt.u32.totalorder %s369_s28, %s594_s19 }
  0x35   : > { %p377_p2 = por %p376_p1, %p375_p10 }
  0x36   : > { %p373_p7 = pneg %p372_p5 }
  0x37   : > { %p379_p6 = por %p378_p4, %p377_p2 }
  0x39   : > { %p380_p9 = pnand %p379_p6, %p373_p7 }
  0x3b   : > { %383 = shalt.err (!%p380_p9)
}
  0x3c   : > { %s384_s6 = scalar_lea.vmem %s600_s24, 128  ;;  %s472_s14 = smov [#allocation2]  }
  0x3d   : > { %p385_p12 = scmp.ne.s32.totalorder %s600_s24, %s384_s6  ;;  %s389_s18 = sshll.u32 %s472_s14, 4  ;;  %s390_s18 = int_to_ptr.vmem [resolvable:$false] %s389_s18 }
  0x3e   : > { %s391_s21 = scalar_lea.vmem %s390_s18, 256  ;;  %p392_p5 = scmp.lt.s32.totalorder %s600_s24, %s390_s18 }
  0x3f   : > { %p387_p13 = pnand %p385_p12, %p371_p3  ;;  %p393_p10 = scmp.lt.s32.totalorder %s391_s21, %s384_s6 }
  0x41   : > { %p388_p0 = pneg %p387_p13  ;;  %p394_p1 = por %p393_p10, %p392_p5 }
  0x43   : > { %p395_p2 = pnand %p394_p1, %p388_p0 }
  0x45   : > { %398 = shalt.err (!%p395_p2)
}
  0x46   : > { %299 = dma.hbm_to_vmem [thread:$0]  (!%p596_p11), %s594_s19, 128, %s600_s24, %s122_s27  }
  0x47   : > { %p707_p7 = scmp.ne.s32.totalorder %s698_s17, 0 }
  0x48   : > { %s630_s22 = sand.u32 (!%p707_p7), 1, %s461_s10   ;;  %p708_p3 = scmp.ne.s32.totalorder (!%p707_p7), %s696_s15, 0 }
  0x49   : > { %141 = sbr.rel (%p707_p7) target bundleno = 109 (0x6d), region = 28  ;;  %s277_s25 = sshll.u32 (!%p707_p7), %s630_s22, 3 }
  0x4a   : > { %s144_s23 = scalar_lea.sflag (!%p707_p7), [#allocation3], %s630_s22  ;;  %s147_s28 = scalar_lea.vmem (!%p707_p7), [#allocation2], %s277_s25 }
  0x50   : > { %444 = dma.done.wait (%p708_p3), %s144_s23, 128  }
  0x51   : > { %446 = vsyncadd (%p708_p3), %s144_s23, 4294967168  ;;  %p709_p4 = scmp.eq.s32.totalorder %s510_s13, 0 }
  0x53   : > { %448 = dma.done.wait (%p709_p4), [#allocation6], 128   ;;  %p710_p11 = pmov %p709_p4 }
  0x54   : > { %s171_s17 = scalar_lea.vmem [#allocation7], %s277_s25  ;;  %s281_s24 = sshll.u32 %s510_s13, 7  ;;  %v172_v0 = vld [vmem:[%s147_s28] sm:$0xff]  ;;  %v173_v1 = vld [vmem:[#allocation5] sm:$0xff] }
  0x55   : > { %450 = vsyncadd (%p710_p11), [#allocation6], 4294967168  ;;  %s190_s19 = sshll.u32 %s171_s17, 4  ;;  %v174_v2 = vadd.f32 %v173_v1, %v172_v0  ;;  %s648_s27 = scalar_lea.hbm %s692_s2, %s281_s24  ;;  %s643_s19 = int_to_ptr.vmem [resolvable:$true] %s190_s19 }
  0x56   : > { %s177_s29 = scalar_lea.sflag [#allocation4], %s630_s22  ;;  %s399_s30 = scalar_lea.vmem %s643_s19, 128 }
  0x57   : > { %175 = vst [vmem:[%s171_s17] sm:$0xff] %v174_v2  ;;  %p400_p6 = scmp.ne.s32.totalorder %s643_s19, %s399_s30  ;;  %s473_s13 = smov [#allocation7]  }
  0x58   : > { %s403_s3 = sshll.u32 %s473_s13, 4  ;;  %s404_s3 = int_to_ptr.vmem [resolvable:$false] %s403_s3 }
  0x59   : > { %p401_p9 = pnand %p400_p6, %p581_p8  ;;  %s405_s4 = scalar_lea.vmem %s404_s3, 256 }
  0x5a   : > { %p406_p13 = scmp.lt.s32.totalorder %s643_s19, %s404_s3  ;;  %p407_p0 = scmp.lt.s32.totalorder %s405_s4, %s399_s30 }
  0x5b   : > { %p402_p12 = pneg %p401_p9 }
  0x5c   : > { %p408_p5 = por %p407_p0, %p406_p13 }
  0x5e   : > { %p409_p10 = pnand %p408_p5, %p402_p12 }
  0x60   : > { %412 = shalt.err (!%p409_p10)
}
  0x61   : > { %s413_s5 = scalar_lea.hbm %s648_s27, 128  ;;  %s417_s18 = scalar_lea.hbm %s692_s2, 256 }
  0x62   : > { %p414_p1 = scmp.ne.s32.totalorder %s648_s27, %s413_s5  ;;  %p418_p3 = scmp.lt.u32.totalorder %s648_s27, %s692_s2 }
  0x63   : > { %p419_p4 = scmp.lt.u32.totalorder %s417_s18, %s413_s5  ;;  %p421_p6 = scmp.lt.u32.totalorder %s413_s5, %s648_s27 }
  0x64   : > { %p415_p2 = pnand %p414_p1, %p581_p8 }
  0x65   : > { %p420_p11 = por %p419_p4, %p418_p3 }
  0x66   : > { %p416_p7 = pneg %p415_p2 }
  0x67   : > { %p422_p9 = por %p421_p6, %p420_p11 }
  0x69   : > { %p423_p12 = pnand %p422_p9, %p416_p7 }
  0x6b   : > { %426 = shalt.err (!%p423_p12)
}
  0x6c   : > { %290 = dma.vmem_to_hbm [thread:$0]  (%p581_p8), %s643_s19, 128, %s648_s27, %s177_s29  }
  0x6d PF: > { %s202_s25 = sand.u32 1, %s457_s9   ;;  %p711_p13 = scmp.ne.s32.totalorder %s697_s16, 0 }
  0x6e   : > { %p712_p0 = scmp.ge.s32.totalorder %s469_s12, 2  ;;  %s203_s23 = scalar_lea.sflag [#allocation4], %s202_s25 }
  0x70   : > { %p301_p5 = pnand %p712_p0, %p711_p13 }
  0x72   : > { %452 = dma.done.wait (!%p301_p5), %s203_s23, 128  }
  0x73   : > { %454 = vsyncadd (!%p301_p5), %s203_s23, 4294967168  ;;  %p16_p10 = scmp.ge.s32.totalorder %s537_s20, 4   ;;  %s713_s9 = smov %s461_s10 }
  0x74   : > { %s714_s10 = smov %s465_s11  ;;  %s715_s11 = smov %s573_s7 }
  0x75   : > { %s716_s12 = smov %s537_s20  ;;  %18 = sbr.rel (!%p16_p10) target bundleno = 6 (0x6), region = 77 }
  0x7c   :  { %208 = vsyncpa [#allocation3], 1 }
  0x7d   :  { %210 = vsyncpa [#allocation3 + $0x1], 1 }
  0x7e   :  { %211 = vsyncpa [#allocation6], 1 }
  0x7f   :  { %212 = vsyncpa [#allocation4], 1 }
  0x80   :  { %214 = vsyncpa [#allocation4 + $0x1], 1 }

// kernel: tpu_custom_call.1
= control target key start
LH: loop header
LB: loop body
LE: loop exit
PB: predicated region body
PF: predicated region fallthrough
CT: control target
= control target key end

     0   :  { %16 = vsyncpa [#allocation6], 0  ;;  %s3168_s0 = inlined_call_operand.vmem [shape: f32[48,16], index: 0, kind: input, shape index: {}]   ;;  %s3169_s1 = inlined_call_operand.hbm [shape: f32[2,8,32], index: 1, kind: input, shape index: {}]   ;;  %s3170_s2 = inlined_call_operand.hbm [shape: f32[2,8,32], index: 2, kind: input, shape index: {}]   ;;  %s3171_s3 = inlined_call_operand.hbm [shape: f32[16,128], index: 3, kind: input, shape index: {}]   ;;  %s3172_s4 = inlined_call_operand.vmem [shape: f32[32,128], index: 4, kind: input, shape index: {}]   ;;  %s3173_s5 = inlined_call_operand.vmem [shape: f32[1,128], index: 5, kind: input, shape index: {}]   ;;  %s3174_s6 = inlined_call_operand.vmem [shape: f32[32,128], index: 6, kind: input, shape index: {}]   ;;  %s3175_s7 = inlined_call_operand.hbm [shape: f32[32,128], index: 7, kind: input, shape index: {}]   ;;  %s3176_s8 = inlined_call_operand.vmem [shape: f32[1,128], index: 8, kind: input, shape index: {}]   ;;  %s3177_s9 = inlined_call_operand.hbm [shape: f32[2,8,32], index: 9, kind: output, shape index: {0}]   ;;  %s3178_s10 = inlined_call_operand.hbm [shape: f32[2,8,32], index: 10, kind: output, shape index: {1}]  }
   0x1   :  { %17 = vsyncpa [#allocation9], 0 }
   0x2   :  { %18 = vsyncpa [#allocation12], 0 }
   0x3   :  { %19 = vsyncpa [#allocation7], 0 }
   0x4   :  { %20 = vsyncpa [#allocation15], 0  ;;  %s2674_s13 = smov [#allocation8]   ;;  %s2675_s15 = smov [#allocation5]  }
   0x5   :  { %s40_s14 = sshll.u32 %s2674_s13, 4  ;;  %s28_s16 = sshll.u32 %s2675_s15, 4  ;;  %s41_s14 = int_to_ptr.vmem [resolvable:$true] %s40_s14  ;;  %s2743_s16 = int_to_ptr.vmem [resolvable:$true] %s28_s16 }
   0x6   :  { %s2532_s19 = scalar_lea.hbm %s3170_s2, 256 }
   0x7   :  { %p2533_p0 = scmp.ne.s32.totalorder %s3170_s2, %s2532_s19  ;;  %p2536_p1 = scmp.lt.u32.totalorder %s2532_s19, %s3170_s2 }
   0x9   :  { %p2538_p2 = pnand %p2536_p1, %p2533_p0 }
   0xb   :  { %2541 = shalt.err (!%p2538_p2)
}
   0xc   :  { %s2542_s24 = scalar_lea.vmem %s41_s14, 256  ;;  %p2547_p4 = scmp.lt.s32.totalorder %s41_s14, %s41_s14 }
   0xd   :  { %p2543_p3 = scmp.ne.s32.totalorder %s41_s14, %s2542_s24  ;;  %p2548_p5 = scmp.lt.s32.totalorder %s2542_s24, %s2542_s24 }
   0xf   :  { %p2549_p6 = por %p2548_p5, %p2547_p4 }
  0x11   :  { %p2550_p7 = pnand %p2549_p6, %p2543_p3 }
  0x13   :  { %2553 = shalt.err (!%p2550_p7)
}
  0x14   :  { %s2676_s25 = smov 128   ;;  %s2677_s26 = smov 8  }
  0x15   :  { %46 = dma.hbm_to_vmem [thread:$0]  %s3170_s2, 256, %s41_s14, [#allocation9], %s2676_s25, %s2676_s25, %s2677_s26  }
  0x16   :  { %s2554_s11 = scalar_lea.hbm %s3169_s1, 256 }
  0x17   :  { %p2555_p8 = scmp.ne.s32.totalorder %s3169_s1, %s2554_s11  ;;  %p2558_p9 = scmp.lt.u32.totalorder %s2554_s11, %s3169_s1 }
  0x19   :  { %p2560_p10 = pnand %p2558_p9, %p2555_p8 }
  0x1b   :  { %2563 = shalt.err (!%p2560_p10)
}
  0x1c   :  { %s2564_s18 = scalar_lea.vmem %s2743_s16, 256  ;;  %p2569_p12 = scmp.lt.s32.totalorder %s2743_s16, %s2743_s16 }
  0x1d   :  { %p2565_p11 = scmp.ne.s32.totalorder %s2743_s16, %s2564_s18  ;;  %p2570_p13 = scmp.lt.s32.totalorder %s2564_s18, %s2564_s18 }
  0x1f   :  { %p2571_p0 = por %p2570_p13, %p2569_p12 }
  0x21   :  { %p2572_p1 = pnand %p2571_p0, %p2565_p11 }
  0x23   :  { %2575 = shalt.err (!%p2572_p1)
}
  0x24   :  { %34 = dma.hbm_to_vmem [thread:$0]  %s3169_s1, 256, %s2743_s16, [#allocation6], %s2676_s25, %s2676_s25, %s2677_s26  }
  0x25   :  { %s2678_s19 = smov [#allocation10]   ;;  %s2679_s21 = smov [#allocation11]  }
  0x26   :  { %s52_s20 = sshll.u32 %s2678_s19, 4  ;;  %s70_s22 = sshll.u32 %s2679_s21, 4  ;;  %s53_s20 = int_to_ptr.vmem [resolvable:$true] %s52_s20  ;;  %s2780_s22 = int_to_ptr.vmem [resolvable:$true] %s70_s22 }
  0x27   :  { %s2576_s27 = scalar_lea.hbm %s3171_s3, 256 }
  0x28   :  { %p2577_p2 = scmp.ne.s32.totalorder %s3171_s3, %s2576_s27  ;;  %p2580_p3 = scmp.lt.u32.totalorder %s2576_s27, %s3171_s3 }
  0x2a   :  { %p2582_p4 = pnand %p2580_p3, %p2577_p2 }
  0x2c   :  { %2585 = shalt.err (!%p2582_p4)
}
  0x2d   :  { %s2586_s1 = scalar_lea.vmem %s53_s20, 256  ;;  %p2591_p6 = scmp.lt.s32.totalorder %s53_s20, %s53_s20 }
  0x2e   :  { %p2587_p5 = scmp.ne.s32.totalorder %s53_s20, %s2586_s1  ;;  %p2592_p7 = scmp.lt.s32.totalorder %s2586_s1, %s2586_s1 }
  0x30   :  { %p2593_p8 = por %p2592_p7, %p2591_p6 }
  0x32   :  { %p2594_p9 = pnand %p2593_p8, %p2587_p5 }
  0x34   :  { %2597 = shalt.err (!%p2594_p9)
}
  0x35   :  { %58 = dma.hbm_to_vmem [thread:$0]  %s3171_s3, 256, %s53_s20, [#allocation9], %s2676_s25, %s2676_s25, %s2677_s26  }
  0x36   :  { %s2598_s17 = scalar_lea.hbm %s3175_s7, 512 }
  0x37   :  { %p2599_p10 = scmp.ne.s32.totalorder %s3175_s7, %s2598_s17  ;;  %p2602_p11 = scmp.lt.u32.totalorder %s2598_s17, %s3175_s7 }
  0x39   :  { %p2604_p12 = pnand %p2602_p11, %p2599_p10 }
  0x3b   :  { %2607 = shalt.err (!%p2604_p12)
}
  0x3c   :  { %s2608_s21 = scalar_lea.vmem %s2780_s22, 512  ;;  %p2613_p0 = scmp.lt.s32.totalorder %s2780_s22, %s2780_s22 }
  0x3d   :  { %p2609_p13 = scmp.ne.s32.totalorder %s2780_s22, %s2608_s21  ;;  %p2614_p1 = scmp.lt.s32.totalorder %s2608_s21, %s2608_s21 }
  0x3f   :  { %p2615_p2 = por %p2614_p1, %p2613_p0 }
  0x41   :  { %p2616_p3 = pnand %p2615_p2, %p2609_p13 }
  0x43   :  { %2619 = shalt.err (!%p2616_p3)
}
  0x44   :  { %76 = dma.hbm_to_vmem [thread:$0]  %s3175_s7, 512, %s2780_s22, [#allocation12], %s2676_s25, %s2676_s25, %s2677_s26  }
  0x45   :  { %2664 = dma.done.wait [#allocation6], 256  }
  0x46   :  { %2665 = vsyncadd [#allocation6], 4294967040 }
  0x47   :  { %2666 = dma.done.wait [#allocation9], 512  }
  0x48   :  { %2667 = vsyncadd [#allocation9], 4294966784 }
  0x49   :  { %2668 = dma.done.wait [#allocation12], 512  }
  0x4a   :  { %2669 = vsyncadd [#allocation12], 4294966784  ;;  %vm119_vm0 = vcmask 130048   ;;  %v110_v0 = vld [vmem:[#allocation10] sm:$0xff]  ;;  %v111_v1 = vld [vmem:[#allocation10 + $0x8] sm:$0xff]  ;;  %vm97_vm1 = vcmask 261120  }
  0x4b   :  { %v108_v2 = vld [vmem:[%s3168_s0 + $0x20] sm:$0xff]  ;;  %v2308_v3 = vpack.c.bf16 %v111_v1, %v110_v0  ;;  %v240_v5 = vld [vmem:[%s3172_s4 + $0x8] sm:$0xff]  ;;  %v95_v7 = vld [vmem:[#allocation5] sm:$0xff]  ;;  %v2680_v11 = vmov 0.0|0.0   ;;  %vm2681_vm2 = vmmov 0   ;;  %v2682_v15 = vmov 0.0  }
  0x4c   :  { %2107 = vmatprep.mubr.msk.f32.mxu1 %vm119_vm0, %v108_v2  ;;  %v239_v4 = vld [vmem:[%s3172_s4] sm:$0xff]  ;;  %v109_v8 = vld [vmem:[%s3168_s0 + $0x28] sm:$0xff]  ;;  %98 = vst.msk [vmem:[#allocation3] sm:$0xff] %vm97_vm1, %v95_v7  ;;  %v241_v12 = vld [vmem:[%s3172_s4 + $0x10] sm:$0xff]  ;;  %s2683_s14 = smov 64   ;;  %s2684_s19 = smov 32  }
  0x4d   :  { %v104_v6 = vld [vmem:[%s3168_s0] sm:$0xff]  ;;  %2420 = vmatprep.subr.bf16.mxu1 %v2308_v3  ;;  %2309 = vmatprep.subr.bf16.mxu0 %v2308_v3  ;;  %v2833_v9 = vpack.c.bf16 %v240_v5, %v239_v4  ;;  %v105_v10 = vld [vmem:[%s3168_s0 + $0x8] sm:$0xff]  ;;  %v242_v13 = vld [vmem:[%s3172_s4 + $0x18] sm:$0xff]  ;;  %s2686_s11 = smov [#allocation14]  }
  0x4e   :  { %2421 = vmatpush3.bf16.msra.mxu1 %v2308_v3  ;;  %2311 = vmatpush3.bf16.msra.mxu0 %v2308_v3  ;;  %v2851_v14 = vpack.c.bf16 %v242_v13, %v241_v12  ;;  %v100_v17 = vld [vmem:[#allocation8] sm:$0xff]  ;;  %v248_v40 = vld [vmem:[#allocation11 + $0x8] sm:$0xff]  ;;  %v106_v41 = vld [vmem:[%s3168_s0 + $0x10] sm:$0xff]  ;;  %s1943_s1 = sshll.u32 %s2686_s11, 4  ;;  %s1944_s1 = int_to_ptr.vmem [resolvable:$true] %s1943_s1 }
  0x4f   :  { %2312 = vmatprep.subr.bf16.mxu1 %v2680_v11  ;;  %2101 = vmatprep.mubr.msk.f32.mxu0 %vm119_vm0, %v104_v6  ;;  %102 = vst.msk [vmem:[#allocation4] sm:$0xff] %vm97_vm1, %v100_v17  ;;  %v2871_v22 = vld [vmem:[%s3173_s5] ss:$0 sm:$0xff]  ;;  %v107_v43 = vld [vmem:[%s3168_s0 + $0x18] sm:$0xff]  ;;  %v249_v44 = vld [vmem:[#allocation11 + $0x10] sm:$0xff]  ;;  %s2620_s16 = scalar_lea.vmem %s1944_s1, 256  ;;  %p2625_p5 = scmp.lt.s32.totalorder %s1944_s1, %s1944_s1 }
  0x50   :  { %2318 = vmatprep.subr.bf16.mxu0 %v2680_v11  ;;  %v247_v39 = vld [vmem:[#allocation11] sm:$0xff]  ;;  %v250_v45 = vld [vmem:[#allocation11 + $0x18] sm:$0xff]  ;;  %v244_v48 = vld [vmem:[%s3174_s6 + $0x8] sm:$0xff]  ;;  %p2621_p4 = scmp.ne.s32.totalorder %s1944_s1, %s2620_s16  ;;  %p2626_p6 = scmp.lt.s32.totalorder %s2620_s16, %s2620_s16 }
  0x51   :  { %2108 = vmatmul.mubr.msk.f32.vlgmr.msra.gmra.mrb[0].mxu1 %vm119_vm0, %v109_v8  ;;  %2102 = vmatmul.mubr.msk.f32.vlgmr.msra.gmra.mrb[0].mxu0 %vm119_vm0, %v105_v10  ;;  %v2883_v42 = vpack.c.bf16 %v248_v40, %v247_v39  ;;  %v96_v46 = vld [vmem:[#allocation5 + $0x8] sm:$0xff]  ;;  %v243_v47 = vld [vmem:[%s3174_s6] sm:$0xff]  ;;  %v2897_v49 = vpack.c.bf16 %v250_v45, %v249_v44  ;;  %v245_v51 = vld [vmem:[%s3174_s6 + $0x10] sm:$0xff] }
  0x52   :  { %2314 = vmatpush3.bf16.msra.mxu1 %v2833_v9  ;;  %2118 = vmatprep.mubr.msk.f32.mxu1 %vm2681_vm2, %v2682_v15  ;;  %99 = vst.msk [vmem:[#allocation3 + $0x8] sm:$0xff] %vm97_vm1, %v96_v46  ;;  %v2902_v50 = vpack.c.bf16 %v244_v48, %v243_v47  ;;  %v246_v52 = vld [vmem:[%s3174_s6 + $0x18] sm:$0xff]  ;;  %v101_v63 = vld [vmem:[#allocation8 + $0x8] sm:$0xff]  ;;  %v2952_v1 = vld [vmem:[%s3176_s8] ss:$0 sm:$0xff]  ;;  %s2685_s8 = smov 96   ;;  %p2627_p7 = por %p2626_p6, %p2625_p5 }
  0x53   :  { %2315 = vmatprep.subr.bf16.mxu1 %v2680_v11  ;;  %v252_v16 = vld [vmem:[#allocation3] sm:$0xff]  ;;  %2104 = vmatprep.mubr.msk.f32.mxu0 %vm119_vm0, %v106_v41  ;;  %v2912_v53 = vpack.c.bf16 %v246_v52, %v245_v51  ;;  %103 = vst.msk [vmem:[#allocation4 + $0x8] sm:$0xff] %vm97_vm1, %v101_v63 }
  0x54   :  { %2320 = vmatpush3.bf16.msra.mxu0 %v2883_v42  ;;  %p2628_p8 = pnand %p2627_p7, %p2621_p4 }
  0x55   :  { %2105 = vmatmul.mubr.msk.f32.gmra.mrb[2].mxu0 %vm119_vm0, %v107_v43  ;;  %2321 = vmatprep.subr.bf16.mxu0 %v2680_v11 }
  0x56   :  { %2317 = vmatpush3.bf16.msra.mxu1 %v2851_v14  ;;  %v255_v28 = vld [vmem:[#allocation4] sm:$0xff]  ;;  %2129 = vmatprep.mubr.msk.f32.mxu0 %vm2681_vm2, %v2682_v15 }
  0x57   :  { %2324 = vmatprep.subr.bf16.mxu1 %v2680_v11 }
  0x58   :  { %2323 = vmatpush3.bf16.msra.mxu0 %v2897_v49 }
  0x59   :  { %2119 = vmatmul.mubr.msk.f32.vlgmr.msra.gmra.mrb[2].mxu1 %vm97_vm1, %v252_v16  ;;  %2330 = vmatprep.subr.bf16.mxu0 %v2680_v11  ;;  %v254_v55 = vld [vmem:[#allocation3 + $0x8] sm:$0xff] }
  0x5a   :  { %2140 = vmatprep.mubr.msk.f32.mxu1 %vm2681_vm2, %v2682_v15  ;;  %2326 = vmatpush3.bf16.msra.mxu1 %v2902_v50  ;;  %v257_v13 = vld [vmem:[#allocation4 + $0x8] sm:$0xff] }
  0x5b   :  { %2327 = vmatprep.subr.bf16.mxu1 %v2680_v11  ;;  %2130 = vmatmul.mubr.msk.f32.vlgmr.msra.gmra.mrb[4].mxu0 %vm97_vm1, %v254_v55 }
  0x5c   :  { %2332 = vmatpush3.bf16.msra.mxu0 %v2833_v9  ;;  %2151 = vmatprep.mubr.msk.f32.mxu0 %vm2681_vm2, %v2682_v15 }
  0x5d   :  { %2333 = vmatprep.subr.bf16.mxu0 %v2680_v11 }
  0x5e   :  { %2329 = vmatpush3.bf16.msra.mxu1 %v2912_v53 }
  0x5f   :  { %2336 = vmatprep.subr.bf16.mxu1 %v2680_v11 }
  0x60   :  { %2335 = vmatpush3.bf16.msra.mxu0 %v2851_v14 }
  0x61   :  { %2342 = vmatprep.subr.bf16.mxu0 %v2680_v11 }
 0x124   :  { %v2862_v18 = vpop.f32.mrb[0].mxu1  ;;  %v2864_v19 = vpop.f32.mrb[0].mxu0 }
 0x125   :  { %v2866_v20 = vpop.f32.mrb[1].mxu1  ;;  %v204_v21 = vpop.f32.mrb[1].mxu0  ;;  %v210_v0 = vadd.f32 %v2864_v19, %v2871_v22 }
 0x126   :  { %v205_v23 = vadd.f32 %v2871_v22, %v204_v21 }
 0x128   :  { %v2928_v58 = vpop.f32.mrb[2].mxu0 }
 0x129   :  { %v2930_v59 = vpop.f32.mrb[3].mxu0 }
 0x12c   :  { %v329_v24 = vpop.f32.mrb[2].mxu1 }
 0x12d   :  { %v333_v25 = vadd.f32 %v329_v24, %v205_v23  ;;  %v2120_v26 = vpop.f32.mrb[3].mxu1 }
 0x12e   :  { %v431_v60 = vpop.f32.mrb[4].mxu0 }
 0x12f   :  { %2436 = vtanh.f32 %v333_v25  ;;  %v1969_v29 = vmul.f32 -1.442695, %v333_v25  ;;  %v2131_v61 = vpop.f32.mrb[5].mxu0 }
 0x131   :  { %2438 = vpow2.f32 %v1969_v29 }
 0x139   :  { %v2437_v27 = vpop.eup %2436 }
 0x13a   :  { %347 = vrot.lane.b32.xlu0 %v2437_v27, %s2683_s14 }
 0x13b   :  { %v2439_v30 = vpop.eup %2438 }
 0x13c   :  { %v337_v31 = vadd.f32 1.0, %v2439_v30 }
 0x13e   :  { %342 = vrot.lane.b32.xlu0 %v255_v28, %s2684_s19  ;;  %2440 = vrcp.f32 %v337_v31 }
 0x148   :  { %v2441_v32 = vpop.eup %2440 }
 0x1ac   :  { %v348_v33 = vpop.permute.xlu0 %347 }
 0x1ad   :  { %v350_v34 = vmul.f32 %v2441_v32, %v348_v33 }
 0x1af   :  { %352 = vrot.lane.b32.xlu1 %v350_v34, %s2684_s19 }
 0x1b0   :  { %v343_v35 = vpop.permute.xlu0 %342 }
 0x1b1   :  { %v345_v36 = vmul.f32 %v2441_v32, %v343_v35 }
 0x221   :  { %v353_v37 = vpop.permute.xlu1 %352 }
 0x222   :  { %v2877_v38 = vadd.f32 %v353_v37, %v345_v36 }
 0x224   :  { %2442 = vtanh.f32 %v2877_v38 }
 0x22e   :  { %v2443_v54 = vpop.eup %2442 }
 0x22f   :  { %358 = vrot.lane.b32.xlu1 %v2443_v54, %s2683_s14 }
 0x2a1   :  { %v359_v56 = vpop.permute.xlu1 %358 }
 0x2a2   :  { %v361_v57 = vmul.f32 %v2441_v32, %v359_v56  ;;  %v215_v56 = vadd.f32 %v2871_v22, %v2930_v59 }
 0x2a4   :  { %436 = vrot.lane.b32.xlu0 %v361_v57, %s2684_s19 }
 0x316   :  { %v437_v62 = vpop.permute.xlu0 %436 }
 0x317   :  { %2141 = vmatmul.mubr.msk.f32.vlgmr.msra.gmra.mrb[4].mxu1 %vm97_vm1, %v437_v62  ;;  %2152 = vmatmul.mubr.msk.f32.vlgmr.msra.gmra.mrb[6].mxu0 %vm97_vm1, %v437_v62 }
 0x318   :  { %2344 = vmatpush3.bf16.msra.mxu0 %v2902_v50  ;;  %2338 = vmatpush3.bf16.msra.mxu1 %v2883_v42 }
 0x319   :  { %2345 = vmatprep.subr.bf16.mxu0 %v2680_v11  ;;  %2339 = vmatprep.subr.bf16.mxu1 %v2680_v11 }
 0x31a   :  { %2173 = vmatprep.mubr.msk.f32.mxu0 %vm2681_vm2, %v2682_v15  ;;  %2162 = vmatprep.mubr.msk.f32.mxu1 %vm2681_vm2, %v2682_v15 }
 0x31c   :  { %2347 = vmatpush3.bf16.msra.mxu0 %v2912_v53  ;;  %2341 = vmatpush3.bf16.msra.mxu1 %v2897_v49 }
 0x31d   :  { %2348 = vmatprep.subr.bf16.mxu1 %v2680_v11  ;;  %2354 = vmatprep.subr.bf16.mxu0 %v2680_v11 }
 0x3ea   :  { %v506_v2 = vpop.f32.mrb[4].mxu1  ;;  %v612_v3 = vpop.f32.mrb[6].mxu0 }
 0x3eb   :  { %v507_v4 = vadd.f32 %v506_v2, %v431_v60  ;;  %v616_v5 = vadd.f32 %v612_v3, %v210_v0  ;;  %v2142_v6 = vpop.f32.mrb[5].mxu1  ;;  %v2153_v7 = vpop.f32.mrb[7].mxu0 }
 0x3ed   :  { %v516_v8 = vadd.f32 %v2952_v1, %v507_v4  ;;  %2444 = vtanh.f32 %v616_v5  ;;  %v1975_v16 = vmul.f32 -1.442695, %v616_v5 }
 0x3ef   :  { %2446 = vtanh.f32 %v516_v8  ;;  %v1973_v17 = vmul.f32 -1.442695, %v516_v8 }
 0x3f0   :  { %2448 = vpow2.f32 %v1975_v16 }
 0x3f1   :  { %2450 = vpow2.f32 %v1973_v17 }
 0x3f7   :  { %v2445_v10 = vpop.eup %2444 }
 0x3f8   :  { %626 = vrot.lane.b32.xlu0 %v2445_v10, %s2683_s14 }
 0x3f9   :  { %v2447_v12 = vpop.eup %2446 }
 0x3fa   :  { %530 = vrot.lane.b32.xlu1 %v2447_v12, %s2683_s14  ;;  %v2449_v19 = vpop.eup %2448 }
 0x3fb   :  { %v2451_v21 = vpop.eup %2450  ;;  %v620_v23 = vadd.f32 1.0, %v2449_v19 }
 0x3fc   :  { %v520_v24 = vadd.f32 1.0, %v2451_v21 }
 0x3fd   :  { %2452 = vrcp.f32 %v620_v23 }
 0x3fe   :  { %525 = vrot.lane.b32.xlu1 %v257_v13, %s2684_s19  ;;  %2454 = vrcp.f32 %v520_v24 }
 0x407   :  { %v2453_v25 = vpop.eup %2452 }
 0x408   :  { %v2455_v28 = vpop.eup %2454  ;;  %v624_v32 = vmul.f32 %v2453_v25, %v2877_v38 }
 0x46a   :  { %v627_v26 = vpop.permute.xlu0 %626 }
 0x46b   :  { %v629_v27 = vmul.f32 %v2453_v25, %v627_v26 }
 0x46c   :  { %v531_v29 = vpop.permute.xlu1 %530 }
 0x46d   :  { %v533_v30 = vmul.f32 %v2455_v28, %v531_v29  ;;  %631 = vrot.lane.b32.xlu1 %v629_v27, %s2684_s19 }
 0x46f   :  { %535 = vrot.lane.b32.xlu0 %v533_v30, %s2684_s19 }
 0x470   :  { %v526_v31 = vpop.permute.xlu1 %525 }
 0x471   :  { %v528_v34 = vmul.f32 %v2455_v28, %v526_v31 }
 0x4df   :  { %v632_v33 = vpop.permute.xlu1 %631 }
 0x4e0   :  { %v2961_v35 = vadd.f32 %v632_v33, %v624_v32 }
 0x4e1   :  { %v536_v36 = vpop.permute.xlu0 %535 }
 0x4e2   :  { %2456 = vtanh.f32 %v2961_v35  ;;  %v2964_v37 = vadd.f32 %v536_v36, %v528_v34  ;;  %v220_v36 = vadd.f32 %v2928_v58, %v2871_v22 }
 0x4e4   :  { %2458 = vtanh.f32 %v2964_v37 }
 0x4ec   :  { %v2457_v39 = vpop.eup %2456 }
 0x4ed   :  { %637 = vrot.lane.b32.xlu1 %v2457_v39, %s2683_s14 }
 0x4ee   :  { %v2459_v40 = vpop.eup %2458 }
 0x4ef   :  { %541 = vrot.lane.b32.xlu0 %v2459_v40, %s2683_s14 }
 0x55f   :  { %v638_v41 = vpop.permute.xlu1 %637 }
 0x560   :  { %v640_v43 = vmul.f32 %v2453_v25, %v638_v41 }
 0x561   :  { %v542_v38 = vpop.permute.xlu0 %541 }
 0x562   :  { %v544_v44 = vmul.f32 %v2455_v28, %v542_v38  ;;  %717 = vrot.lane.b32.xlu1 %v640_v43, %s2684_s19 }
 0x564   :  { %642 = vrot.lane.b32.xlu0 %v544_v44, %s2684_s19 }
 0x5d4   :  { %v718_v45 = vpop.permute.xlu1 %717 }
 0x5d5   :  { %2174 = vmatmul.mubr.msk.f32.vlgmr.msra.gmra.mrb[8].mxu0 %vm97_vm1, %v718_v45 }
 0x5d6   :  { %v643_v46 = vpop.permute.xlu0 %642  ;;  %2356 = vmatpush3.bf16.msra.mxu0 %v2883_v42  ;;  %2195 = vmatprep.mubr.msk.f32.mxu0 %vm2681_vm2, %v2682_v15 }
 0x5d7   :  { %2163 = vmatmul.mubr.msk.f32.vlgmr.msra.gmra.mrb[6].mxu1 %vm97_vm1, %v643_v46  ;;  %2357 = vmatprep.subr.bf16.mxu0 %v2680_v11 }
 0x5d8   :  { %2350 = vmatpush3.bf16.msra.mxu1 %v2833_v9  ;;  %2184 = vmatprep.mubr.msk.f32.mxu1 %vm2681_vm2, %v2682_v15 }
 0x5d9   :  { %2351 = vmatprep.subr.bf16.mxu1 %v2680_v11 }
 0x5da   :  { %2359 = vmatpush3.bf16.msra.mxu0 %v2897_v49 }
 0x5db   :  { %2366 = vmatprep.subr.bf16.mxu0 %v2680_v11 }
 0x5dc   :  { %2353 = vmatpush3.bf16.msra.mxu1 %v2851_v14 }
 0x5dd   :  { %2360 = vmatprep.subr.bf16.mxu1 %v2680_v11 }
 0x5df   :  { %2185 = vmatmul.mubr.msk.f32.vlgmr.msra.gmra.mrb[8].mxu1 %vm97_vm1, %v718_v45 }
 0x5e0   :  { %2362 = vmatpush3.bf16.msra.mxu1 %v2902_v50  ;;  %2206 = vmatprep.mubr.msk.f32.mxu1 %vm2681_vm2, %v2682_v15 }
 0x5e1   :  { %2363 = vmatprep.subr.bf16.mxu1 %v2680_v11 }
 0x5e4   :  { %2365 = vmatpush3.bf16.msra.mxu1 %v2912_v53 }
 0x5e5   :  { %2372 = vmatprep.subr.bf16.mxu1 %v2680_v11 }
 0x6a8   :  { %v787_v47 = vpop.f32.mrb[8].mxu0 }
 0x6a9   :  { %v2175_v48 = vpop.f32.mrb[9].mxu0 }
 0x6aa   :  { %v712_v51 = vpop.f32.mrb[6].mxu1 }
 0x6ab   :  { %v788_v52 = vadd.f32 %v787_v47, %v712_v51  ;;  %v2164_v54 = vpop.f32.mrb[7].mxu1 }
 0x6ad   :  { %v791_v55 = vadd.f32 %v2952_v1, %v788_v52 }
 0x6af   :  { %2460 = vtanh.f32 %v791_v55  ;;  %v1978_v0 = vmul.f32 -1.442695, %v791_v55 }
 0x6b2   :  { %v883_v57 = vpop.f32.mrb[8].mxu1 }
 0x6b3   :  { %v887_v60 = vadd.f32 %v883_v57, %v215_v56  ;;  %v2186_v61 = vpop.f32.mrb[9].mxu1 }
 0x6b5   :  { %2462 = vtanh.f32 %v887_v60  ;;  %v1980_v2 = vmul.f32 -1.442695, %v887_v60 }
 0x6b6   :  { %2464 = vpow2.f32 %v1978_v0 }
 0x6b7   :  { %2466 = vpow2.f32 %v1980_v2 }
 0x6b9   :  { %v2461_v62 = vpop.eup %2460 }
 0x6ba   :  { %801 = vrot.lane.b32.xlu0 %v2461_v62, %s2683_s14 }
 0x6bf   :  { %v2463_v63 = vpop.eup %2462 }
 0x6c0   :  { %897 = vrot.lane.b32.xlu1 %v2463_v63, %s2683_s14  ;;  %v2465_v3 = vpop.eup %2464 }
 0x6c1   :  { %v795_v4 = vadd.f32 1.0, %v2465_v3  ;;  %v2467_v5 = vpop.eup %2466 }
 0x6c2   :  { %v891_v6 = vadd.f32 1.0, %v2467_v5 }
 0x6c3   :  { %2468 = vrcp.f32 %v795_v4 }
 0x6c4   :  { %2470 = vrcp.f32 %v891_v6 }
 0x6cd   :  { %v2469_v59 = vpop.eup %2468 }
 0x6ce   :  { %v2471_v10 = vpop.eup %2470  ;;  %v799_v16 = vmul.f32 %v2469_v59, %v2964_v37 }
 0x6cf   :  { %v895_v21 = vmul.f32 %v2471_v10, %v2961_v35 }
 0x72c   :  { %v802_v7 = vpop.permute.xlu0 %801 }
 0x72d   :  { %v804_v8 = vmul.f32 %v2469_v59, %v802_v7 }
 0x72f   :  { %806 = vrot.lane.b32.xlu0 %v804_v8, %s2684_s19 }
 0x732   :  { %v898_v12 = vpop.permute.xlu1 %897 }
 0x733   :  { %v900_v13 = vmul.f32 %v2471_v10, %v898_v12 }
 0x735   :  { %902 = vrot.lane.b32.xlu1 %v900_v13, %s2684_s19 }
 0x7a1   :  { %v807_v17 = vpop.permute.xlu0 %806 }
 0x7a2   :  { %v3000_v19 = vadd.f32 %v807_v17, %v799_v16 }
 0x7a4   :  { %2472 = vtanh.f32 %v3000_v19 }
 0x7a7   :  { %v903_v23 = vpop.permute.xlu1 %902 }
 0x7a8   :  { %v3004_v24 = vadd.f32 %v903_v23, %v895_v21 }
 0x7aa   :  { %2474 = vtanh.f32 %v3004_v24 }
 0x7ae   :  { %v2473_v25 = vpop.eup %2472 }
 0x7af   :  { %812 = vrot.lane.b32.xlu0 %v2473_v25, %s2683_s14  ;;  %v225_v25 = vadd.f32 %v2871_v22, %v2866_v20 }
 0x7b4   :  { %v2475_v26 = vpop.eup %2474 }
 0x7b5   :  { %908 = vrot.lane.b32.xlu1 %v2475_v26, %s2683_s14 }
 0x821   :  { %v813_v27 = vpop.permute.xlu0 %812 }
 0x822   :  { %v815_v28 = vmul.f32 %v2469_v59, %v813_v27 }
 0x824   :  { %913 = vrot.lane.b32.xlu0 %v815_v28, %s2684_s19 }
 0x827   :  { %v909_v29 = vpop.permute.xlu1 %908 }
 0x828   :  { %v911_v30 = vmul.f32 %v2471_v10, %v909_v29 }
 0x82a   :  { %988 = vrot.lane.b32.xlu1 %v911_v30, %s2684_s19 }
 0x896   :  { %v914_v31 = vpop.permute.xlu0 %913 }
 0x897   :  { %2196 = vmatmul.mubr.msk.f32.vlgmr.msra.gmra.mrb[10].mxu0 %vm97_vm1, %v914_v31 }
 0x898   :  { %2368 = vmatpush3.bf16.msra.mxu0 %v2833_v9  ;;  %2217 = vmatprep.mubr.msk.f32.mxu0 %vm2681_vm2, %v2682_v15 }
 0x899   :  { %2369 = vmatprep.subr.bf16.mxu0 %v2680_v11 }
 0x89c   :  { %2371 = vmatpush3.bf16.msra.mxu0 %v2851_v14  ;;  %v989_v32 = vpop.permute.xlu1 %988 }
 0x89d   :  { %2207 = vmatmul.mubr.msk.f32.vlgmr.msra.gmra.mrb[10].mxu1 %vm97_vm1, %v989_v32  ;;  %2378 = vmatprep.subr.bf16.mxu0 %v2680_v11 }
 0x89e   :  { %2374 = vmatpush3.bf16.msra.mxu1 %v2883_v42  ;;  %2228 = vmatprep.mubr.msk.f32.mxu1 %vm2681_vm2, %v2682_v15 }
 0x89f   :  { %2218 = vmatmul.mubr.msk.f32.vlgmr.msra.gmra.mrb[12].mxu0 %vm97_vm1, %v989_v32  ;;  %2375 = vmatprep.subr.bf16.mxu1 %v2680_v11 }
 0x8a0   :  { %2380 = vmatpush3.bf16.msra.mxu0 %v2902_v50  ;;  %2239 = vmatprep.mubr.msk.f32.mxu0 %vm2681_vm2, %v2682_v15 }
 0x8a1   :  { %2381 = vmatprep.subr.bf16.mxu0 %v2680_v11 }
 0x8a2   :  { %2377 = vmatpush3.bf16.msra.mxu1 %v2897_v49 }
 0x8a3   :  { %2384 = vmatprep.subr.bf16.mxu1 %v2680_v11 }
 0x8a4   :  { %2383 = vmatpush3.bf16.msra.mxu0 %v2912_v53 }
 0x8a5   :  { %2390 = vmatprep.subr.bf16.mxu0 %v2680_v11 }
 0x96a   :  { %v983_v33 = vpop.f32.mrb[10].mxu0 }
 0x96b   :  { %v2197_v34 = vpop.f32.mrb[11].mxu0 }
 0x970   :  { %v1058_v35 = vpop.f32.mrb[10].mxu1 }
 0x971   :  { %v1059_v37 = vadd.f32 %v1058_v35, %v983_v33  ;;  %v2208_v39 = vpop.f32.mrb[11].mxu1 }
 0x972   :  { %v1154_v40 = vpop.f32.mrb[12].mxu0 }
 0x973   :  { %v1062_v41 = vadd.f32 %v2952_v1, %v1059_v37  ;;  %v1158_v43 = vadd.f32 %v1154_v40, %v220_v36  ;;  %v2219_v38 = vpop.f32.mrb[13].mxu0 }
 0x975   :  { %2476 = vtanh.f32 %v1062_v41  ;;  %v1983_v46 = vmul.f32 -1.442695, %v1062_v41  ;;  %v1985_v47 = vmul.f32 -1.442695, %v1158_v43 }
 0x976   :  { %2478 = vtanh.f32 %v1158_v43 }
 0x977   :  { %2480 = vpow2.f32 %v1983_v46 }
 0x978   :  { %2482 = vpow2.f32 %v1985_v47 }
 0x97f   :  { %v2477_v44 = vpop.eup %2476 }
 0x980   :  { %v2479_v45 = vpop.eup %2478  ;;  %1072 = vrot.lane.b32.xlu0 %v2477_v44, %s2683_s14 }
 0x981   :  { %1168 = vrot.lane.b32.xlu1 %v2479_v45, %s2683_s14  ;;  %v2481_v58 = vpop.eup %2480 }
 0x982   :  { %v2483_v48 = vpop.eup %2482  ;;  %v1066_v51 = vadd.f32 1.0, %v2481_v58 }
 0x983   :  { %v1162_v52 = vadd.f32 1.0, %v2483_v48 }
 0x984   :  { %2484 = vrcp.f32 %v1066_v51 }
 0x985   :  { %2486 = vrcp.f32 %v1162_v52 }
 0x98e   :  { %v2485_v54 = vpop.eup %2484 }
 0x98f   :  { %v2487_v56 = vpop.eup %2486  ;;  %v1070_v62 = vmul.f32 %v2485_v54, %v3000_v19 }
 0x990   :  { %v1166_v63 = vmul.f32 %v2487_v56, %v3004_v24 }
 0x9f2   :  { %v1073_v55 = vpop.permute.xlu0 %1072 }
 0x9f3   :  { %v1169_v57 = vpop.permute.xlu1 %1168  ;;  %v1075_v60 = vmul.f32 %v2485_v54, %v1073_v55 }
 0x9f4   :  { %v1171_v61 = vmul.f32 %v2487_v56, %v1169_v57 }
 0x9f5   :  { %1077 = vrot.lane.b32.xlu0 %v1075_v60, %s2684_s19 }
 0x9f6   :  { %1173 = vrot.lane.b32.xlu1 %v1171_v61, %s2684_s19 }
 0xa67   :  { %v1078_v0 = vpop.permute.xlu0 %1077 }
 0xa68   :  { %v1174_v2 = vpop.permute.xlu1 %1173  ;;  %v3041_v3 = vadd.f32 %v1078_v0, %v1070_v62 }
 0xa69   :  { %v3043_v4 = vadd.f32 %v1174_v2, %v1166_v63  ;;  %v230_v63 = vadd.f32 %v2862_v18, %v2871_v22 }
 0xa6a   :  { %2488 = vtanh.f32 %v3041_v3 }
 0xa6b   :  { %2490 = vtanh.f32 %v3043_v4 }
 0xa74   :  { %v2489_v5 = vpop.eup %2488 }
 0xa75   :  { %v2491_v6 = vpop.eup %2490  ;;  %1083 = vrot.lane.b32.xlu0 %v2489_v5, %s2683_s14 }
 0xa76   :  { %1179 = vrot.lane.b32.xlu1 %v2491_v6, %s2683_s14 }
 0xae7   :  { %v1084_v59 = vpop.permute.xlu0 %1083 }
 0xae8   :  { %v1180_v7 = vpop.permute.xlu1 %1179  ;;  %v1086_v8 = vmul.f32 %v2485_v54, %v1084_v59 }
 0xae9   :  { %v1182_v10 = vmul.f32 %v2487_v56, %v1180_v7 }
 0xaea   :  { %1184 = vrot.lane.b32.xlu0 %v1086_v8, %s2684_s19 }
 0xaeb   :  { %1259 = vrot.lane.b32.xlu1 %v1182_v10, %s2684_s19 }
 0xb5c   :  { %v1185_v12 = vpop.permute.xlu0 %1184 }
 0xb5d   :  { %v1260_v13 = vpop.permute.xlu1 %1259  ;;  %2229 = vmatmul.mubr.msk.f32.vlgmr.msra.gmra.mrb[12].mxu1 %vm97_vm1, %v1185_v12 }
 0xb5e   :  { %2240 = vmatmul.mubr.msk.f32.vlgmr.msra.gmra.mrb[14].mxu0 %vm97_vm1, %v1260_v13  ;;  %2386 = vmatpush3.bf16.msra.mxu1 %v2833_v9 }
 0xb5f   :  { %2387 = vmatprep.subr.bf16.mxu1 %v2680_v11  ;;  %2250 = vmatprep.mubr.msk.f32.mxu1 %vm2681_vm2, %v2682_v15 }
 0xb60   :  { %2392 = vmatpush3.bf16.msra.mxu0 %v2883_v42  ;;  %2261 = vmatprep.mubr.msk.f32.mxu0 %vm2681_vm2, %v2682_v15 }
 0xb61   :  { %2393 = vmatprep.subr.bf16.mxu0 %v2680_v11 }
 0xb62   :  { %2389 = vmatpush3.bf16.msra.mxu1 %v2851_v14 }
 0xb63   :  { %2396 = vmatprep.subr.bf16.mxu1 %v2680_v11 }
 0xb64   :  { %2395 = vmatpush3.bf16.msra.mxu0 %v2897_v49 }
 0xb65   :  { %2251 = vmatmul.mubr.msk.f32.vlgmr.msra.gmra.mrb[14].mxu1 %vm97_vm1, %v1260_v13  ;;  %2402 = vmatprep.subr.bf16.mxu0 %v2680_v11 }
 0xb66   :  { %2398 = vmatpush3.bf16.msra.mxu1 %v2902_v50  ;;  %2272 = vmatprep.mubr.msk.f32.mxu1 %vm2681_vm2, %v2682_v15 }
 0xb67   :  { %2399 = vmatprep.subr.bf16.mxu1 %v2680_v11 }
 0xb6a   :  { %2401 = vmatpush3.bf16.msra.mxu1 %v2912_v53 }
 0xb6b   :  { %2408 = vmatprep.subr.bf16.mxu1 %v2680_v11 }
 0xc30   :  { %v1254_v16 = vpop.f32.mrb[12].mxu1 }
 0xc31   :  { %v1329_v17 = vpop.f32.mrb[14].mxu0  ;;  %v2230_v19 = vpop.f32.mrb[13].mxu1 }
 0xc32   :  { %v1330_v21 = vadd.f32 %v1329_v17, %v1254_v16  ;;  %v2241_v23 = vpop.f32.mrb[15].mxu0 }
 0xc34   :  { %v1333_v24 = vadd.f32 %v2952_v1, %v1330_v21 }
 0xc36   :  { %2492 = vtanh.f32 %v1333_v24  ;;  %v1988_v31 = vmul.f32 -1.442695, %v1333_v24 }
 0xc38   :  { %v1425_v26 = vpop.f32.mrb[14].mxu1 }
 0xc39   :  { %v1429_v27 = vadd.f32 %v1425_v26, %v225_v25  ;;  %v2252_v28 = vpop.f32.mrb[15].mxu1 }
 0xc3b   :  { %2494 = vtanh.f32 %v1429_v27  ;;  %v1990_v32 = vmul.f32 -1.442695, %v1429_v27 }
 0xc3c   :  { %2496 = vpow2.f32 %v1988_v31 }
 0xc3d   :  { %2498 = vpow2.f32 %v1990_v32 }
 0xc40   :  { %v2493_v29 = vpop.eup %2492 }
 0xc41   :  { %1343 = vrot.lane.b32.xlu0 %v2493_v29, %s2683_s14 }
 0xc45   :  { %v2495_v30 = vpop.eup %2494 }
 0xc46   :  { %1439 = vrot.lane.b32.xlu1 %v2495_v30, %s2683_s14  ;;  %v2497_v33 = vpop.eup %2496 }
 0xc47   :  { %v1337_v34 = vadd.f32 1.0, %v2497_v33  ;;  %v2499_v35 = vpop.eup %2498 }
 0xc48   :  { %v1433_v36 = vadd.f32 1.0, %v2499_v35 }
 0xc49   :  { %2500 = vrcp.f32 %v1337_v34 }
 0xc4a   :  { %2502 = vrcp.f32 %v1433_v36 }
 0xc53   :  { %v2501_v20 = vpop.eup %2500 }
 0xc54   :  { %v2503_v40 = vpop.eup %2502  ;;  %v1341_v38 = vmul.f32 %v2501_v20, %v3041_v3 }
 0xc55   :  { %v1437_v46 = vmul.f32 %v2503_v40, %v3043_v4 }
 0xcb3   :  { %v1344_v37 = vpop.permute.xlu0 %1343 }
 0xcb4   :  { %v1346_v39 = vmul.f32 %v2501_v20, %v1344_v37 }
 0xcb6   :  { %1348 = vrot.lane.b32.xlu0 %v1346_v39, %s2684_s19 }
 0xcb8   :  { %v1440_v41 = vpop.permute.xlu1 %1439 }
 0xcb9   :  { %v1442_v43 = vmul.f32 %v2503_v40, %v1440_v41 }
 0xcbb   :  { %1444 = vrot.lane.b32.xlu1 %v1442_v43, %s2684_s19 }
 0xd28   :  { %v1349_v44 = vpop.permute.xlu0 %1348 }
 0xd29   :  { %v3080_v45 = vadd.f32 %v1349_v44, %v1341_v38 }
 0xd2b   :  { %2504 = vtanh.f32 %v3080_v45 }
 0xd2d   :  { %v1445_v47 = vpop.permute.xlu1 %1444 }
 0xd2e   :  { %v3084_v58 = vadd.f32 %v1445_v47, %v1437_v46 }
 0xd30   :  { %2506 = vtanh.f32 %v3084_v58 }
 0xd35   :  { %v2505_v48 = vpop.eup %2504 }
 0xd36   :  { %1354 = vrot.lane.b32.xlu0 %v2505_v48, %s2683_s14 }
 0xd3a   :  { %v2507_v51 = vpop.eup %2506 }
 0xd3b   :  { %1450 = vrot.lane.b32.xlu1 %v2507_v51, %s2683_s14 }
 0xda8   :  { %v1355_v52 = vpop.permute.xlu0 %1354 }
 0xda9   :  { %v1357_v54 = vmul.f32 %v2501_v20, %v1355_v52 }
 0xdab   :  { %1455 = vrot.lane.b32.xlu0 %v1357_v54, %s2684_s19 }
 0xdad   :  { %v1451_v55 = vpop.permute.xlu1 %1450 }
 0xdae   :  { %v1453_v56 = vmul.f32 %v2503_v40, %v1451_v55 }
 0xdb0   :  { %1530 = vrot.lane.b32.xlu1 %v1453_v56, %s2684_s19 }
 0xe1d   :  { %v1456_v57 = vpop.permute.xlu0 %1455 }
 0xe1e   :  { %2262 = vmatmul.mubr.msk.f32.vlgmr.msra.gmra.mrb[16].mxu0 %vm97_vm1, %v1456_v57 }
 0xe1f   :  { %2404 = vmatpush3.bf16.msra.mxu0 %v2833_v9  ;;  %2283 = vmatprep.mubr.msk.f32.mxu0 %vm2681_vm2, %v2682_v15 }
 0xe20   :  { %2405 = vmatprep.subr.bf16.mxu0 %v2680_v11 }
 0xe22   :  { %v1531_v60 = vpop.permute.xlu1 %1530 }
 0xe23   :  { %2407 = vmatpush3.bf16.msra.mxu0 %v2851_v14  ;;  %2273 = vmatmul.mubr.msk.f32.vlgmr.msra.gmra.mrb[16].mxu1 %vm97_vm1, %v1531_v60 }
 0xe24   :  { %2414 = vmatprep.subr.bf16.mxu0 %v2680_v11  ;;  %2410 = vmatpush3.bf16.msra.mxu1 %v2883_v42 }
 0xe25   :  { %2411 = vmatprep.subr.bf16.mxu1 %v2680_v11  ;;  %2294 = vmatprep.mubr.msk.f32.mxu1 %vm2681_vm2, %v2682_v15 }
 0xe26   :  { %2284 = vmatmul.mubr.msk.f32.vlgmr.msra.gmra.mrb[18].mxu0 %vm97_vm1, %v1531_v60 }
 0xe27   :  { %2416 = vmatpush3.bf16.msra.mxu0 %v2902_v50  ;;  %2305 = vmatprep.mubr.msk.f32.mxu0 %vm2681_vm2, %v2682_v15 }
 0xe28   :  { %2417 = vmatprep.subr.bf16.mxu0 %v2680_v11  ;;  %2413 = vmatpush3.bf16.msra.mxu1 %v2897_v49 }
 0xe2b   :  { %2419 = vmatpush3.bf16.msra.mxu0 %v2912_v53 }
 0xef1   :  { %v1525_v9 = vpop.f32.mrb[16].mxu0 }
 0xef2   :  { %v2263_v14 = vpop.f32.mrb[17].mxu0 }
 0xef6   :  { %v1600_v42 = vpop.f32.mrb[16].mxu1 }
 0xef7   :  { %v1601_v61 = vadd.f32 %v1600_v42, %v1525_v9  ;;  %v2274_v62 = vpop.f32.mrb[17].mxu1 }
 0xef9   :  { %v1604_v0 = vadd.f32 %v2952_v1, %v1601_v61  ;;  %v1696_v50 = vpop.f32.mrb[18].mxu0 }
 0xefa   :  { %v1700_v2 = vadd.f32 %v1696_v50, %v230_v63  ;;  %v2285_v3 = vpop.f32.mrb[19].mxu0 }
 0xefb   :  { %2508 = vtanh.f32 %v1604_v0  ;;  %v1993_v49 = vmul.f32 -1.442695, %v1604_v0 }
 0xefc   :  { %2510 = vtanh.f32 %v1700_v2  ;;  %v1995_v53 = vmul.f32 -1.442695, %v1700_v2 }
 0xefd   :  { %2512 = vpow2.f32 %v1993_v49 }
 0xefe   :  { %2514 = vpow2.f32 %v1995_v53 }
 0xf05   :  { %v2509_v11 = vpop.eup %2508 }
 0xf06   :  { %v2511_v15 = vpop.eup %2510  ;;  %1614 = vrot.lane.b32.xlu0 %v2509_v11, %s2683_s14 }
 0xf07   :  { %1710 = vrot.lane.b32.xlu1 %v2511_v15, %s2683_s14  ;;  %v2513_v4 = vpop.eup %2512 }
 0xf08   :  { %v2515_v5 = vpop.eup %2514  ;;  %v1608_v18 = vadd.f32 1.0, %v2513_v4 }
 0xf09   :  { %v1704_v22 = vadd.f32 1.0, %v2515_v5 }
 0xf0a   :  { %2516 = vrcp.f32 %v1608_v18 }
 0xf0b   :  { %2518 = vrcp.f32 %v1704_v22 }
 0xf14   :  { %v2517_v6 = vpop.eup %2516 }
 0xf15   :  { %v2519_v7 = vpop.eup %2518  ;;  %v1612_v13 = vmul.f32 %v2517_v6, %v3080_v45 }
 0xf16   :  { %v1708_v16 = vmul.f32 %v2519_v7, %v3084_v58 }
 0xf78   :  { %v1615_v59 = vpop.permute.xlu0 %1614 }
 0xf79   :  { %v1711_v8 = vpop.permute.xlu1 %1710  ;;  %v1617_v10 = vmul.f32 %v2517_v6, %v1615_v59 }
 0xf7a   :  { %v1713_v12 = vmul.f32 %v2519_v7, %v1711_v8 }
 0xf7b   :  { %1619 = vrot.lane.b32.xlu0 %v1617_v10, %s2684_s19 }
 0xf7c   :  { %1715 = vrot.lane.b32.xlu1 %v1713_v12, %s2684_s19 }
 0xfed   :  { %v1620_v17 = vpop.permute.xlu0 %1619 }
 0xfee   :  { %v1716_v19 = vpop.permute.xlu1 %1715  ;;  %v1622_v21 = vadd.f32 %v1620_v17, %v1612_v13 }
 0xfef   :  { %v1718_v23 = vadd.f32 %v1716_v19, %v1708_v16 }
 0xff0   :  { %2520 = vtanh.f32 %v1622_v21 }
 0xff1   :  { %2522 = vtanh.f32 %v1718_v23 }
 0xffa   :  { %v2521_v24 = vpop.eup %2520 }
 0xffb   :  { %v2523_v25 = vpop.eup %2522  ;;  %1625 = vrot.lane.b32.xlu0 %v2521_v24, %s2683_s14 }
 0xffc   :  { %1721 = vrot.lane.b32.xlu1 %v2523_v25, %s2683_s14 }
0x106d   :  { %v1626_v26 = vpop.permute.xlu0 %1625 }
0x106e   :  { %v1722_v27 = vpop.permute.xlu1 %1721  ;;  %v1628_v28 = vmul.f32 %v2517_v6, %v1626_v26 }
0x106f   :  { %v1724_v29 = vmul.f32 %v2519_v7, %v1722_v27 }
0x1070   :  { %1726 = vrot.lane.b32.xlu0 %v1628_v28, %s2684_s19 }
0x1071   :  { %1801 = vrot.lane.b32.xlu1 %v1724_v29, %s2684_s19 }
0x10e2   :  { %v1727_v30 = vpop.permute.xlu0 %1726 }
0x10e3   :  { %v1802_v31 = vpop.permute.xlu1 %1801  ;;  %2295 = vmatmul.mubr.msk.f32.vlgmr.msra.gmra.mrb[18].mxu1 %vm97_vm1, %v1727_v30 }
0x10e4   :  { %1901 = vst.msk [vmem:[#allocation3] sm:$0xff] %vm97_vm1, %v1802_v31  ;;  %1920 = vst.msk [vmem:[#allocation13] sm:$0xff] %vm97_vm1, %v1802_v31  ;;  %2306 = vmatmul.mubr.msk.f32.vlgmr.msra.gmra.mrb[20].mxu0 %vm97_vm1, %v1802_v31 }
0x11b6   :  { %v1796_v32 = vpop.f32.mrb[18].mxu1 }
0x11b7   :  { %v1871_v33 = vpop.f32.mrb[20].mxu0  ;;  %v2296_v34 = vpop.f32.mrb[19].mxu1 }
0x11b8   :  { %v1872_v35 = vadd.f32 %v1871_v33, %v1796_v32  ;;  %v2307_v36 = vpop.f32.mrb[21].mxu0 }
0x11ba   :  { %v1875_v20 = vadd.f32 %v2952_v1, %v1872_v35 }
0x11bc   :  { %2524 = vtanh.f32 %v1875_v20  ;;  %v1998_v39 = vmul.f32 -1.442695, %v1875_v20 }
0x11be   :  { %2526 = vpow2.f32 %v1998_v39 }
0x11c6   :  { %v2525_v37 = vpop.eup %2524 }
0x11c7   :  { %1885 = vrot.lane.b32.xlu0 %v2525_v37, %s2683_s14 }
0x11c8   :  { %v2527_v40 = vpop.eup %2526 }
0x11c9   :  { %v1879_v41 = vadd.f32 1.0, %v2527_v40 }
0x11cb   :  { %2528 = vrcp.f32 %v1879_v41 }
0x11d5   :  { %v2529_v43 = vpop.eup %2528 }
0x11d6   :  { %v1883_v45 = vmul.f32 %v2529_v43, %v1622_v21 }
0x1239   :  { %v1886_v38 = vpop.permute.xlu0 %1885 }
0x123a   :  { %v1888_v44 = vmul.f32 %v2529_v43, %v1886_v38 }
0x123c   :  { %1890 = vrot.lane.b32.xlu1 %v1888_v44, %s2684_s19 }
0x1240   :  { %1903 = vrot.lane.b32.xlu1 %v1718_v23, %s2685_s8 }
0x12ae   :  { %v1891_v46 = vpop.permute.xlu1 %1890 }
0x12af   :  { %v1893_v47 = vadd.f32 %v1891_v46, %v1883_v45 }
0x12b1   :  { %2530 = vtanh.f32 %v1893_v47  ;;  %1913 = vrot.lane.b32.xlu1 %v1893_v47, %s2685_s8 }
0x12b2   :  { %v1904_v1 = vpop.permute.xlu1 %1903 }
0x12b3   :  { %1906 = vst.msk [vmem:[#allocation4] sm:$0xff] %vm97_vm1, %v1904_v1  ;;  %1921 = vst.msk [vmem:[#allocation14] sm:$0xff] %vm97_vm1, %v1904_v1 }
0x12bb   :  { %v2531_v58 = vpop.eup %2530 }
0x12bc   :  { %1896 = vrot.lane.b32.xlu0 %v2531_v58, %s2683_s14 }
0x1323   :  { %v1914_v48 = vpop.permute.xlu1 %1913 }
0x1324   :  { %1916 = vst.msk [vmem:[#allocation4 + $0x8] sm:$0xff] %vm97_vm1, %v1914_v48  ;;  %1925 = vst.msk [vmem:[#allocation14 + $0x8] sm:$0xff] %vm97_vm1, %v1914_v48 }
0x1325   :  { %2631 = shalt.err (!%p2628_p8)
}
0x1326   :  { %s2632_s15 = scalar_lea.hbm %s3178_s10, 256 }
0x1327   :  { %p2633_p9 = scmp.ne.s32.totalorder %s3178_s10, %s2632_s15  ;;  %p2636_p10 = scmp.lt.u32.totalorder %s2632_s15, %s3178_s10 }
0x1329   :  { %p2638_p11 = pnand %p2636_p10, %p2633_p9 }
0x132b   :  { %2641 = shalt.err (!%p2638_p11)
}
0x132c   :  { %1949 = dma.vmem_to_hbm [thread:$0]  %s1944_s1, 256, %s3178_s10, [#allocation15], %s2676_s25, %s2676_s25, %s2677_s26  }
0x132d   :  { %s2687_s21 = smov [#allocation13]  }
0x132e   :  { %v1897_v51 = vpop.permute.xlu0 %1896  ;;  %s1931_s3 = sshll.u32 %s2687_s21, 4  ;;  %s1932_s3 = int_to_ptr.vmem [resolvable:$true] %s1931_s3 }
0x132f   :  { %v1899_v52 = vmul.f32 %v2529_v43, %v1897_v51  ;;  %s2642_s20 = scalar_lea.vmem %s1932_s3, 256  ;;  %p2647_p13 = scmp.lt.s32.totalorder %s1932_s3, %s1932_s3 }
0x1330   :  { %p2643_p12 = scmp.ne.s32.totalorder %s1932_s3, %s2642_s20  ;;  %p2648_p0 = scmp.lt.s32.totalorder %s2642_s20, %s2642_s20 }
0x1331   :  { %1908 = vrot.lane.b32.xlu0 %v1899_v52, %s2684_s19 }
0x1332   :  { %p2649_p1 = por %p2648_p0, %p2647_p13 }
0x1334   :  { %p2650_p2 = pnand %p2649_p1, %p2643_p12 }
0x13a3   :  { %v1909_v54 = vpop.permute.xlu0 %1908 }
0x13a4   :  { %1911 = vst.msk [vmem:[#allocation3 + $0x8] sm:$0xff] %vm97_vm1, %v1909_v54  ;;  %1923 = vst.msk [vmem:[#allocation13 + $0x8] sm:$0xff] %vm97_vm1, %v1909_v54 }
0x13a5   :  { %2653 = shalt.err (!%p2650_p2)
}
0x13a6   :  { %s2654_s24 = scalar_lea.hbm %s3177_s9, 256 }
0x13a7   :  { %p2655_p3 = scmp.ne.s32.totalorder %s3177_s9, %s2654_s24  ;;  %p2658_p4 = scmp.lt.u32.totalorder %s2654_s24, %s3177_s9 }
0x13a9   :  { %p2660_p5 = pnand %p2658_p4, %p2655_p3 }
0x13ab   :  { %2663 = shalt.err (!%p2660_p5)
}
0x13ac   :  { %1937 = dma.vmem_to_hbm [thread:$0]  %s1932_s3, 256, %s3177_s9, [#allocation7], %s2676_s25, %s2676_s25, %s2677_s26  }
0x13ad   :  { %2670 = dma.done.wait [#allocation7], 256  }
0x13ae   :  { %2671 = vsyncadd [#allocation7], 4294967040 }
0x13af   :  { %2672 = dma.done.wait [#allocation15], 256  }
0x13b0   :  { %2673 = vsyncadd [#allocation15], 4294967040 }
0x13b1   :  { %1956 = vsyncpa [#allocation6], 1 }
0x13b2   :  { %1957 = vsyncpa [#allocation9], 1 }
0x13b3   :  { %1958 = vsyncpa [#allocation12], 1 }
0x13b4   :  { %1959 = vsyncpa [#allocation7], 1 }
0x13b5   :  { %1960 = vsyncpa [#allocation15], 1 }

</bundles_post_ra>
